<compile_context>
chip_gen: v6e
topology: v6e:2x2x1
jax: 0.10.0
libtpu: 0.0.40
codegen_flags: <defaults>
</compile_context>

<pallas_src>
import jax
import jax.numpy as jnp
from jax import lax
from jax.experimental import pallas as pl
from jax.experimental.pallas import tpu as pltpu


# ----------------------------------------------------------------------------
# kernel
# ----------------------------------------------------------------------------
def _build_kernel(H, W, Cin, Cout, compute_dtype):
    HW = H * W

    def kernel(x_ref, w_ref, b_ref, h_ref, out_ref):
        # x_ref:   (1, HW, Cin)   activation tokens for one sample
        # w_ref:   (9*Cin, Cout)  im2col conv weight, tap-major (k = dy*3 + dx)
        # b_ref:   (1, Cout)      Conv2dZeros bias
        # h_ref:   (1, Cout)      exp(logs * logscale_factor), precomputed
        # out_ref: (1, Cout, HW)  output, channel-major (lane-dense) layout
        x = x_ref[0]                                      # (HW, Cin)
        x3 = x.reshape(H, W, Cin)

        # zero padding (pad=1) built functionally: no scratch, no re-zeroing,
        # parallel-grid safe.
        zrow = jnp.zeros((1, W, Cin), dtype=x.dtype)
        zcol = jnp.zeros((H + 2, 1, Cin), dtype=x.dtype)
        xp = jnp.concatenate([zrow, x3, zrow], axis=0)    # (H+2, W,   Cin)
        xp = jnp.concatenate([zcol, xp, zcol], axis=1)    # (H+2, W+2, Cin)

        # im2col: one (HW, 9*Cin) LHS -> single MXU matmul with K = 9*Cin.
        taps = [xp[dy:dy + H, dx:dx + W, :].reshape(HW, Cin)
                for dy in range(3) for dx in range(3)]
        lhs = jnp.concatenate(taps, axis=-1)              # (HW, 9*Cin)

        y = jnp.dot(lhs.astype(compute_dtype),
                    w_ref[...].astype(compute_dtype),
                    preferred_element_type=jnp.float32)   # (HW, Cout)

        # Conv2dZeros epilogue: + bias, then * exp(logs * logscale_factor).
        y = (y + b_ref[...]) * h_ref[...]

        # lane-dense store: (Cout, HW) slab, last dim is a multiple of 128.
        out_ref[0] = y.T.astype(out_ref.dtype)

    return kernel


# ----------------------------------------------------------------------------
# wrapper
# ----------------------------------------------------------------------------
def conv2d_zeros(x, weight, bias, logs, *, logscale_factor=3.0,
                 compute_dtype=jnp.float32):
    """Conv2dZeros forward.

    x:      (N, Cin, H, W)    NCHW, as in the torch module
    weight: (Cout, Cin, 3, 3) OIHW (torch nn.Conv2d layout; zero-init in module)
    bias:   (Cout,) or (1, Cout, 1, 1)
    logs:   (Cout,) or (1, Cout, 1, 1)
    returns (N, Cout, H, W)
    """
    N, Cin, H, W = x.shape
    Cout = weight.shape[0]
    HW = H * W

    # ---- layout glue (wrapper only) ----
    x_tok = jnp.transpose(x, (0, 2, 3, 1)).reshape(N, HW, Cin).astype(jnp.float32)
    # OIHW -> (9*Cin, Cout), tap-major: row (dy*3+dx)*Cin + ci  ==  W[co, ci, dy, dx]
    w_im2col = jnp.transpose(weight, (2, 3, 1, 0)).reshape(9 * Cin, Cout)
    w_im2col = w_im2col.astype(jnp.float32)
    b_row = bias.reshape(1, Cout).astype(jnp.float32)
    # loop-invariant scale: exp(logs * logscale_factor), computed once.
    h_row = jnp.exp(logs.reshape(1, Cout).astype(jnp.float32) * logscale_factor)

    kernel = _build_kernel(H, W, Cin, Cout, compute_dtype)

    out = pl.pallas_call(
        kernel,
        grid=(N,),
        in_specs=[
            pl.BlockSpec((1, HW, Cin), lambda n: (n, 0, 0)),   # x tokens
            pl.BlockSpec((9 * Cin, Cout), lambda n: (0, 0)),   # weight (resident)
            pl.BlockSpec((1, Cout), lambda n: (0, 0)),         # bias
            pl.BlockSpec((1, Cout), lambda n: (0, 0)),         # exp(logs*f)
        ],
        out_specs=pl.BlockSpec((1, Cout, HW), lambda n: (n, 0, 0)),
        out_shape=jax.ShapeDtypeStruct((N, Cout, HW), jnp.float32),
        compiler_params=pltpu.CompilerParams(
            dimension_semantics=("parallel",)),  # batch is independent -> v7x 2-TC split
    )(x_tok, w_im2col, b_row, h_row)

    # (N, Cout, HW) is already channel-major: just reshape back to NCHW.
    return out.reshape(N, Cout, H, W)


# ----------------------------------------------------------------------------
# pure-JAX reference (identical math to the torch module's forward)
# ----------------------------------------------------------------------------
def conv2d_zeros_ref(x, weight, bias, logs, logscale_factor=3.0):
    conv = lax.conv_general_dilated(
        x, weight, window_strides=(1, 1), padding=((1, 1), (1, 1)),
        dimension_numbers=("NCHW", "OIHW", "NCHW"),
        precision=lax.Precision.HIGHEST)
    conv = conv + bias.reshape(1, -1, 1, 1)
    return conv * jnp.exp(logs.reshape(1, -1, 1, 1) * logscale_factor)


# ----------------------------------------------------------------------------
if __name__ == "__main__":
    N, Cin, Cout, H, W = 2, 4, 8, 16, 16

    key = jax.random.PRNGKey(0)
    kx, kw, kb, kl = jax.random.split(key, 4)
    x = jax.random.normal(kx, (N, Cin, H, W), jnp.float32)

    # (1) true module init: zero conv weight / bias / logs -> output is all zeros.
    w0 = jnp.zeros((Cout, Cin, 3, 3), jnp.float32)
    b0 = jnp.zeros((Cout,), jnp.float32)
    l0 = jnp.zeros((Cout,), jnp.float32)
    y0 = conv2d_zeros(x, w0, b0, l0)
    jax.block_until_ready(y0)
    assert y0.shape == (N, Cout, H, W)
    assert jnp.allclose(y0, 0.0, atol=1e-6)

    # (2) non-degenerate parameters (as after training) vs pure-JAX reference.
    w = 0.05 * jax.random.normal(kw, (Cout, Cin, 3, 3), jnp.float32)
    b = 0.10 * jax.random.normal(kb, (Cout,), jnp.float32)
    l = 0.10 * jax.random.normal(kl, (Cout,), jnp.float32)
    y = conv2d_zeros(x, w, b, l)
    y_ref = conv2d_zeros_ref(x, w, b, l)
    jax.block_until_ready((y, y_ref))
    err = float(jnp.max(jnp.abs(y - y_ref)))
    assert err < 5e-3, f"max abs err vs reference: {err}"

    print("KERNEL_OK")
</pallas_src>

<mosaic_0001>
module attributes {stable_mosaic.version = 11 : i64} {
  func.func @kernel(%arg0: i32, %arg1: memref<1x256x4xf32, #tpu.memory_space<vmem>>, %arg2: memref<36x8xf32, #tpu.memory_space<vmem>>, %arg3: memref<1x8xf32, #tpu.memory_space<vmem>>, %arg4: memref<1x8xf32, #tpu.memory_space<vmem>>, %arg5: memref<1x8x256xf32, #tpu.memory_space<vmem>>) attributes {dimension_semantics = [#tpu.dimension_semantics<parallel>], iteration_bounds = array<i64: 2>, scalar_prefetch = 0 : i64, scratch_operands = 0 : i64, tpu.core_type = #tpu.core_type<tc>, window_params = [{transform_indices = @transform_0, window_bounds = array<i64: 1, 256, 4>}, {pipeline_mode = #tpu.pipeline_mode<synchronous>, transform_indices = @transform_1, window_bounds = array<i64: 36, 8>}, {pipeline_mode = #tpu.pipeline_mode<synchronous>, transform_indices = @transform_2, window_bounds = array<i64: 1, 8>}, {pipeline_mode = #tpu.pipeline_mode<synchronous>, transform_indices = @transform_3, window_bounds = array<i64: 1, 8>}, {transform_indices = @transform_4, window_bounds = array<i64: 1, 8, 256>}]} {
    %c0 = arith.constant 0 : index
    %c0_0 = arith.constant 0 : index
    %c0_1 = arith.constant 0 : index
    %0 = vector.load %arg1[%c0, %c0_0, %c0_1] : memref<1x256x4xf32, #tpu.memory_space<vmem>>, vector<1x256x4xf32>
    %1 = vector.shape_cast %0 : vector<1x256x4xf32> to vector<256x4xf32>
    %2 = vector.shape_cast %1 : vector<256x4xf32> to vector<16x16x4xf32>
    %cst = arith.constant 0.000000e+00 : f32
    %3 = vector.broadcast %cst : f32 to vector<1x16x4xf32>
    %cst_2 = arith.constant 0.000000e+00 : f32
    %4 = vector.broadcast %cst_2 : f32 to vector<18x1x4xf32>
    %5 = tpu.concatenate %3, %2, %3 in 0 : vector<1x16x4xf32>, vector<16x16x4xf32>, vector<1x16x4xf32> -> vector<18x16x4xf32>
    %6 = tpu.concatenate %4, %5, %4 in 1 : vector<18x1x4xf32>, vector<18x16x4xf32>, vector<18x1x4xf32> -> vector<18x18x4xf32>
    %7 = vector.extract_strided_slice %6 {offsets = [0, 0, 0], sizes = [16, 16, 4], strides = [1, 1, 1]} : vector<18x18x4xf32> to vector<16x16x4xf32>
    %8 = vector.shape_cast %7 : vector<16x16x4xf32> to vector<256x4xf32>
    %9 = vector.extract_strided_slice %6 {offsets = [0, 1, 0], sizes = [16, 16, 4], strides = [1, 1, 1]} : vector<18x18x4xf32> to vector<16x16x4xf32>
    %10 = vector.shape_cast %9 : vector<16x16x4xf32> to vector<256x4xf32>
    %11 = vector.extract_strided_slice %6 {offsets = [0, 2, 0], sizes = [16, 16, 4], strides = [1, 1, 1]} : vector<18x18x4xf32> to vector<16x16x4xf32>
    %12 = vector.shape_cast %11 : vector<16x16x4xf32> to vector<256x4xf32>
    %13 = vector.extract_strided_slice %6 {offsets = [1, 0, 0], sizes = [16, 16, 4], strides = [1, 1, 1]} : vector<18x18x4xf32> to vector<16x16x4xf32>
    %14 = vector.shape_cast %13 : vector<16x16x4xf32> to vector<256x4xf32>
    %15 = vector.extract_strided_slice %6 {offsets = [1, 1, 0], sizes = [16, 16, 4], strides = [1, 1, 1]} : vector<18x18x4xf32> to vector<16x16x4xf32>
    %16 = vector.shape_cast %15 : vector<16x16x4xf32> to vector<256x4xf32>
    %17 = vector.extract_strided_slice %6 {offsets = [1, 2, 0], sizes = [16, 16, 4], strides = [1, 1, 1]} : vector<18x18x4xf32> to vector<16x16x4xf32>
    %18 = vector.shape_cast %17 : vector<16x16x4xf32> to vector<256x4xf32>
    %19 = vector.extract_strided_slice %6 {offsets = [2, 0, 0], sizes = [16, 16, 4], strides = [1, 1, 1]} : vector<18x18x4xf32> to vector<16x16x4xf32>
    %20 = vector.shape_cast %19 : vector<16x16x4xf32> to vector<256x4xf32>
    %21 = vector.extract_strided_slice %6 {offsets = [2, 1, 0], sizes = [16, 16, 4], strides = [1, 1, 1]} : vector<18x18x4xf32> to vector<16x16x4xf32>
    %22 = vector.shape_cast %21 : vector<16x16x4xf32> to vector<256x4xf32>
    %23 = vector.extract_strided_slice %6 {offsets = [2, 2, 0], sizes = [16, 16, 4], strides = [1, 1, 1]} : vector<18x18x4xf32> to vector<16x16x4xf32>
    %24 = vector.shape_cast %23 : vector<16x16x4xf32> to vector<256x4xf32>
    %25 = tpu.concatenate %8, %10, %12, %14, %16, %18, %20, %22, %24 in 1 : vector<256x4xf32>, vector<256x4xf32>, vector<256x4xf32>, vector<256x4xf32>, vector<256x4xf32>, vector<256x4xf32>, vector<256x4xf32>, vector<256x4xf32>, vector<256x4xf32> -> vector<256x36xf32>
    %c0_3 = arith.constant 0 : index
    %c0_4 = arith.constant 0 : index
    %26 = vector.load %arg2[%c0_3, %c0_4] : memref<36x8xf32, #tpu.memory_space<vmem>>, vector<36x8xf32>
    %cst_5 = arith.constant dense<0.000000e+00> : vector<256x8xf32>
    %27 = tpu.matmul %25, %26, %cst_5 {dimension_numbers = #tpu.dot_dimension_numbers<[1], [0], [0], [1], [0, 0, 1, 1], [], []>} : vector<256x36xf32>, vector<36x8xf32>, vector<256x8xf32> -> vector<256x8xf32>
    %c0_6 = arith.constant 0 : index
    %c0_7 = arith.constant 0 : index
    %28 = vector.load %arg3[%c0_6, %c0_7] : memref<1x8xf32, #tpu.memory_space<vmem>>, vector<1x8xf32>
    %29 = vector.broadcast %28 : vector<1x8xf32> to vector<256x8xf32>
    %30 = arith.addf %27, %29 : vector<256x8xf32>
    %c0_8 = arith.constant 0 : index
    %c0_9 = arith.constant 0 : index
    %31 = vector.load %arg4[%c0_8, %c0_9] : memref<1x8xf32, #tpu.memory_space<vmem>>, vector<1x8xf32>
    %32 = vector.broadcast %31 : vector<1x8xf32> to vector<256x8xf32>
    %33 = arith.mulf %30, %32 : vector<256x8xf32>
    %34 = tpu.transpose %33, [1, 0] : vector<256x8xf32> -> vector<8x256xf32>
    %c0_10 = arith.constant 0 : index
    %c0_11 = arith.constant 0 : index
    %c0_12 = arith.constant 0 : index
    %35 = vector.load %arg5[%c0_10, %c0_11, %c0_12] : memref<1x8x256xf32, #tpu.memory_space<vmem>>, vector<1x8x256xf32>
    %36 = vector.shape_cast %35 : vector<1x8x256xf32> to vector<8x256xf32>
    %37 = vector.shape_cast %34 : vector<8x256xf32> to vector<1x8x256xf32>
    tpu.vector_store %arg5[%c0_10, %c0_11, %c0_12], %37 {strides = array<i32>} : memref<1x8x256xf32, #tpu.memory_space<vmem>>, vector<1x8x256xf32>,
    return
  }
  func.func @transform_0(%arg0: i32) -> (i32, i32, i32) {
    %c0_i32 = arith.constant 0 : i32
    %c0_i32_0 = arith.constant 0 : i32
    %c0_i32_1 = arith.constant 0 : i32
    return %arg0, %c0_i32, %c0_i32_0 : i32, i32, i32
  }
  func.func @transform_1(%arg0: i32) -> (i32, i32) {
    %c0_i32 = arith.constant 0 : i32
    %c0_i32_0 = arith.constant 0 : i32
    %c0_i32_1 = arith.constant 0 : i32
    return %c0_i32, %c0_i32_0 : i32, i32
  }
  func.func @transform_2(%arg0: i32) -> (i32, i32) {
    %c0_i32 = arith.constant 0 : i32
    %c0_i32_0 = arith.constant 0 : i32
    %c0_i32_1 = arith.constant 0 : i32
    return %c0_i32, %c0_i32_0 : i32, i32
  }
  func.func @transform_3(%arg0: i32) -> (i32, i32) {
    %c0_i32 = arith.constant 0 : i32
    %c0_i32_0 = arith.constant 0 : i32
    %c0_i32_1 = arith.constant 0 : i32
    return %c0_i32, %c0_i32_0 : i32, i32
  }
  func.func @transform_4(%arg0: i32) -> (i32, i32, i32) {
    %c0_i32 = arith.constant 0 : i32
    %c0_i32_0 = arith.constant 0 : i32
    %c0_i32_1 = arith.constant 0 : i32
    return %arg0, %c0_i32, %c0_i32_0 : i32, i32, i32
  }
}

</mosaic_0001>

<bundles_post_ra>
// kernel: tpu_custom_call.1
= control target key start
LH: loop header
LB: loop body
LE: loop exit
PB: predicated region body
PF: predicated region fallthrough
CT: control target
= control target key end

     0   :  { %9 = vsyncpa [#allocation3], 0  ;;  %s4357_s0 = inlined_call_operand.vmem [shape: f32[2,256,4], index: 0, kind: input, shape index: {}]   ;;  %s4358_s1 = inlined_call_operand.vmem [shape: f32[36,8], index: 1, kind: input, shape index: {}]   ;;  %s4359_s2 = inlined_call_operand.vmem [shape: f32[1,8], index: 2, kind: input, shape index: {}]   ;;  %s4360_s3 = inlined_call_operand.vmem [shape: f32[1,8], index: 3, kind: input, shape index: {}]   ;;  %s4361_s4 = inlined_call_operand.hbm [shape: f32[2,8,256], index: 4, kind: output, shape index: {}]  }
   0x1   :  { %11 = vsyncpa [#allocation3 + $0x1], 0  ;;  %s2474_s15 = smov 0   ;;  %s2476_s16 = smov 0  }
   0x2   :  { %s2478_s17 = smov 0   ;;  %s2480_s18 = smov 0  }
   0x3 LB: > { %s2495_s19 = sadd.s32 4294967295, %s2437_s18   ;;  %s2150_s20 = sadd.s32 4294967294, %s2437_s18   ;;  %s2437_s18 = sphi %s2480_s18, %s4724_s18   ;;  %s2433_s17 = sphi %s2478_s17, %s4723_s17   ;;  %s2429_s16 = sphi %s2476_s16, %s4722_s16   ;;  %s2425_s15 = sphi %s2474_s15, %s4721_s15  }
   0x4   : > { %s2499_s21 = sadd.s32 1, %s2437_s18   ;;  %s113_s22 = sadd.s32 1, %s2433_s17 }
   0x5   : > { %s110_s23 = ssub.s32 %s2437_s18, %s2499_s21  ;;  %p123_p0 = scmp.ne.s32.totalorder %s2433_s17, %s2429_s16 }
   0x6   : > { %p111_p1 = scmp.eq.s32.totalorder %s110_s23, 0  ;;  %p124_p2 = scmp.eq.s32.totalorder %s2495_s19, 1 }
   0x7   : > { %p129_p3 = scmp.ne.s32.totalorder %s2429_s16, %s2425_s15  ;;  %p130_p4 = scmp.eq.s32.totalorder %s2150_s20, 1 }
   0x8   : > { %s2510_s24 = scalar_select %p111_p1, %s2433_s17, %s113_s22  }
   0x9   : > { %p2512_p5 = por %p124_p2, %p123_p0  ;;  %p2516_p6 = por %p130_p4, %p129_p3 }
   0xa   : > { %p2153_p7 = scmp.ge.s32.totalorder %s2437_s18, 1  ;;  %p165_p8 = scmp.lt.s32.totalorder %s2437_s18, 3 }
   0xc   : > { %p166_p9 = pnand %p2153_p7, %p165_p8 }
   0xe   : > { %169 = sbr.rel (%p166_p9) target bundleno = 928 (0x3a0), region = 36 }
  0x13   : > { %vm261_vm0 = vcmask 1040384   ;;  %p191_p10 = scmp.lt.s32.totalorder %s2495_s19, 1  ;;  %v2439_v0 = vmov 0.0   ;;  %vm427_vm1 = vcmask 1046528   ;;  %s2440_s6 = smov 4   ;;  %vm508_vm2 = vcmask 1045504  }
  0x14   : > { %v2523_v1 = vrot.slane %v2439_v0, 7  ;;  %s2441_s7 = smov 8   ;;  %s2442_s8 = smov 12   ;;  %vm1369_vm3 = vcmask 31744   ;;  %vm1402_vm4 = vcmask 64512   ;;  %vm1435_vm5 = vcmask 97280  }
  0x15   : > { %s192_s27 = scalar_select %p191_p10, %s2495_s19, 1  ;;  %vm1742_vm6 = vcmask 1043456   ;;  %vm1468_vm7 = vcmask 130048   ;;  %vm1501_vm8 = vcmask 162816   ;;  %vm1534_vm9 = vcmask 195584  }
  0x16   : > { %4503 = vst [vmem:[#allocation5_spill] sm:$0xff] %v2523_v1  ;;  %v2528_v2 = vsel %vm261_vm0, 0.0, %v2523_v1  ;;  %v2532_v3 = vsel %vm261_vm0, %v2523_v1, 0.0  ;;  %v429_v4 = vrot.slane %v2523_v1, 1  ;;  %s2443_s9 = smov 16   ;;  %s2444_s10 = smov 20  }
  0x17   : > { %4504 = vst [vmem:[#allocation6_spill] sm:$0xff] %v2528_v2  ;;  %v428_v5 = vrot.slane %v2528_v2, 1  ;;  %v431_v6 = vrot.slane %v2532_v3, 1  ;;  %s2197_s28 = sshll.u32 %s192_s27, 8  ;;  %s2445_s11 = smov 24   ;;  %vm1567_vm10 = vcmask 228352  }
  0x18   : > { %s2540_s5 = scalar_lea.vmem %s4357_s0, %s2197_s28  ;;  %s2446_s29 = smov 28   ;;  %vm1600_vm11 = vcmask 261120   ;;  %vm1645_vm12 = vcmask 293888  }
  0x19   : > { %v430_v7 = vsel %vm427_vm1, %v428_v5, %v429_v4  ;;  %v432_v8 = vsel %vm427_vm1, %v429_v4, %v431_v6  ;;  %v196_v9 = vld [vmem:[%s2540_s5] sm:$0xff]  ;;  %v197_v10 = vld [vmem:[%s2540_s5 + $0x8] sm:$0xff]  ;;  %v198_v11 = vld [vmem:[%s2540_s5 + $0x10] sm:$0xff]  ;;  %s2198_s20 = sshll.u32 %s2495_s19, 8  ;;  %s2448_s19 = smov [#allocation2]  }
  0x1a   : > { %v2547_v12 = vpack.i.bf16 %v432_v8, %v430_v7  ;;  %v264_v13 = vrot.slane %v196_v9, 7  ;;  %v265_v14 = vrot.slane %v197_v10, 7  ;;  %v199_v15 = vld [vmem:[%s2540_s5 + $0x18] sm:$0xff]  ;;  %v200_v16 = vld [vmem:[%s2540_s5 + $0x20] sm:$0xff]  ;;  %v201_v17 = vld [vmem:[%s2540_s5 + $0x28] sm:$0xff]  ;;  %v267_v18 = vrot.slane %v198_v11, 7  ;;  %s2089_s27 = scalar_lea.hbm %s4361_s4, %s2198_s20 }
  0x1b   : > { %v268_v19 = vrot.slane %v199_v15, 7  ;;  %v270_v20 = vrot.slane %v200_v16, 7  ;;  %v271_v21 = vrot.slane %v201_v17, 7  ;;  %v202_v22 = vld [vmem:[%s2540_s5 + $0x30] sm:$0xff]  ;;  %v203_v31 = vld [vmem:[%s2540_s5 + $0x38] sm:$0xff]  ;;  %v204_v40 = vld [vmem:[%s2540_s5 + $0x40] sm:$0xff] }
  0x1c   : > { %4505 = vst [vmem:[#allocation7_spill] sm:$0xff] %v2547_v12  ;;  %2353 = vrot.lane.b32.xlu0 %v2547_v12, %s2440_s6  ;;  %v2556_v23 = vsel %vm261_vm0, %v264_v13, %v265_v14  ;;  %v2559_v24 = vsel %vm261_vm0, %v265_v14, 0.0  ;;  %v2562_v25 = vsel %vm261_vm0, 0.0, %v264_v13  ;;  %v273_v26 = vrot.slane %v202_v22, 7  ;;  %v205_v49 = vld [vmem:[%s2540_s5 + $0x48] sm:$0xff]  ;;  %v206_v50 = vld [vmem:[%s2540_s5 + $0x50] sm:$0xff] }
  0x1d   : > { %4506 = vst [vmem:[#allocation8_spill] sm:$0xff] %v2556_v23  ;;  %4507 = vst [vmem:[#allocation9_spill] sm:$0xff] %v2562_v25  ;;  %v434_v27 = vrot.slane %v2556_v23, 1  ;;  %v436_v28 = vrot.slane %v2559_v24, 1  ;;  %v433_v29 = vrot.slane %v2562_v25, 1  ;;  %v2568_v30 = vsel %vm261_vm0, %v267_v18, %v268_v19  ;;  %v207_v55 = vld [vmem:[%s2540_s5 + $0x58] sm:$0xff] }
  0x1e   : > { %v2572_v32 = vsel %vm261_vm0, 0.0, %v267_v18  ;;  %v439_v33 = vrot.slane %v2568_v30, 1  ;;  %v2576_v34 = vsel %vm261_vm0, %v268_v19, 0.0  ;;  %v2579_v35 = vsel %vm261_vm0, %v270_v20, %v271_v21  ;;  %v208_v4 = vld [vmem:[%s2540_s5 + $0x60] sm:$0xff]  ;;  %v209_v5 = vld [vmem:[%s2540_s5 + $0x68] sm:$0xff]  ;;  %v210_v19 = vld [vmem:[%s2540_s5 + $0x70] sm:$0xff] }
  0x1f   : > { %4508 = vst [vmem:[#allocation10_spill] sm:$0xff] %v2572_v32  ;;  %v2582_v36 = vsel %vm427_vm1, %v434_v27, %v436_v28  ;;  %v2585_v37 = vsel %vm427_vm1, %v433_v29, %v434_v27  ;;  %v438_v38 = vrot.slane %v2572_v32, 1  ;;  %v441_v39 = vrot.slane %v2576_v34, 1  ;;  %v218_v12 = vld [vmem:[%s2540_s5 + $0xb0] sm:$0xff]  ;;  %s2381_s30 = sshll.u32 %s2448_s19, 4  ;;  %s2382_s30 = int_to_ptr.vmem [resolvable:$false] %s2381_s30 }
  0x20   : > { %607 = vrot.lane.b32.xlu1 %v2582_v36, %s2440_s6  ;;  %605 = vrot.lane.b32.xlu0 %v2585_v37, %s2440_s6  ;;  %v2595_v41 = vsel %vm261_vm0, 0.0, %v270_v20  ;;  %v444_v42 = vrot.slane %v2579_v35, 1  ;;  %v2599_v43 = vsel %vm261_vm0, %v271_v21, 0.0  ;;  %v274_v44 = vrot.slane %v203_v31, 7  ;;  %v211_v20 = vld [vmem:[%s2540_s5 + $0x78] sm:$0xff] }
  0x21   : > { %v2602_v45 = vsel %vm427_vm1, %v438_v38, %v439_v33  ;;  %v2605_v46 = vsel %vm427_vm1, %v439_v33, %v441_v39  ;;  %v443_v47 = vrot.slane %v2595_v41, 1  ;;  %v446_v48 = vrot.slane %v2599_v43, 1  ;;  %v212_v39 = vld [vmem:[%s2540_s5 + $0x80] sm:$0xff] }
  0x22   : > { %v2612_v51 = vsel %vm261_vm0, %v273_v26, %v274_v44  ;;  %v2615_v52 = vsel %vm261_vm0, 0.0, %v273_v26  ;;  %v2618_v53 = vsel %vm261_vm0, %v274_v44, 0.0  ;;  %v276_v54 = vrot.slane %v204_v40, 7  ;;  %v213_v40 = vld [vmem:[%s2540_s5 + $0x88] sm:$0xff] }
  0x23   : > { %v2622_v56 = vsel %vm427_vm1, %v443_v47, %v444_v42  ;;  %v2629_v57 = vsel %vm427_vm1, %v444_v42, %v446_v48  ;;  %v277_v58 = vrot.slane %v205_v49, 7  ;;  %v279_v60 = vrot.slane %v206_v50, 7 }
  0x24   : > { %609 = vrot.lane.b32.xlu1 %v2602_v45, %s2440_s6  ;;  %611 = vrot.lane.b32.xlu0 %v2605_v46, %s2440_s6  ;;  %v2632_v59 = vsel %vm261_vm0, 0.0, %v276_v54  ;;  %v448_v61 = vrot.slane %v2615_v52, 1  ;;  %v449_v62 = vrot.slane %v2612_v51, 1  ;;  %v451_v63 = vrot.slane %v2618_v53, 1 }
  0x25   : > { %v280_v0 = vrot.slane %v207_v55, 7  ;;  %v2640_v6 = vsel %vm261_vm0, %v276_v54, %v277_v58  ;;  %v2643_v7 = vsel %vm261_vm0, %v277_v58, 0.0  ;;  %v453_v8 = vrot.slane %v2632_v59, 1  ;;  %v214_v54 = vld [vmem:[%s2540_s5 + $0x90] sm:$0xff] }
  0x26   : > { %v454_v9 = vrot.slane %v2640_v6, 1  ;;  %v2652_v10 = vsel %vm261_vm0, 0.0, %v279_v60  ;;  %v282_v11 = vrot.slane %v208_v4, 7  ;;  %v283_v13 = vrot.slane %v209_v5, 7 }
  0x27   : > { %4509 = vst [vmem:[#allocation11_spill] sm:$0xff] %v2652_v10  ;;  %v2655_v14 = vsel %vm427_vm1, %v448_v61, %v449_v62  ;;  %v2658_v15 = vsel %vm427_vm1, %v449_v62, %v451_v63  ;;  %v456_v16 = vrot.slane %v2643_v7, 1  ;;  %v2662_v17 = vsel %vm261_vm0, %v279_v60, %v280_v0  ;;  %v215_v63 = vld [vmem:[%s2540_s5 + $0x98] sm:$0xff] }
  0x28   : > { %613 = vrot.lane.b32.xlu1 %v2622_v56, %s2440_s6  ;;  %615 = vrot.lane.b32.xlu0 %v2629_v57, %s2440_s6  ;;  %4510 = vst [vmem:[#allocation12_spill] sm:$0xff] %v2658_v15  ;;  %4511 = vst [vmem:[#allocation13_spill] sm:$0xff] %v2662_v17  ;;  %v2665_v18 = vsel %vm261_vm0, %v280_v0, 0.0  ;;  %v458_v21 = vrot.slane %v2652_v10, 1  ;;  %v2675_v22 = vsel %vm427_vm1, %v453_v8, %v454_v9  ;;  %v459_v26 = vrot.slane %v2662_v17, 1 }
  0x29   : > { %4512 = vst [vmem:[#allocation14_spill] sm:$0xff] %v2675_v22  ;;  %v2679_v27 = vsel %vm261_vm0, %v282_v11, %v283_v13  ;;  %v2682_v28 = vsel %vm261_vm0, 0.0, %v282_v11  ;;  %v2685_v29 = vsel %vm427_vm1, %v454_v9, %v456_v16  ;;  %v461_v31 = vrot.slane %v2665_v18, 1 }
  0x2a   : > { %4513 = vst [vmem:[#allocation15_spill] sm:$0xff] %v2679_v27  ;;  %4514 = vst [vmem:[#allocation16_spill] sm:$0xff] %v2682_v28  ;;  %v285_v33 = vrot.slane %v210_v19, 7  ;;  %v286_v38 = vrot.slane %v211_v20, 7  ;;  %v2691_v42 = vsel %vm261_vm0, %v283_v13, 0.0  ;;  %v463_v44 = vrot.slane %v2682_v28, 1 }
  0x2b   : > { %4515 = vst [vmem:[#allocation17_spill] sm:$0xff] %v2685_v29  ;;  %v464_v47 = vrot.slane %v2679_v27, 1  ;;  %v2700_v48 = vsel %vm427_vm1, %v458_v21, %v459_v26  ;;  %v288_v49 = vrot.slane %v212_v39, 7  ;;  %v289_v50 = vrot.slane %v213_v40, 7  ;;  %v216_v21 = vld [vmem:[%s2540_s5 + $0xa0] sm:$0xff] }
  0x2c   : > { %617 = vrot.lane.b32.xlu1 %v2655_v14, %s2440_s6  ;;  %619 = vrot.lane.b32.xlu0 %v2658_v15, %s2440_s6  ;;  %4516 = vst [vmem:[#allocation18_spill] sm:$0xff] %v2700_v48  ;;  %v2704_v55 = vsel %vm427_vm1, %v459_v26, %v461_v31  ;;  %v466_v58 = vrot.slane %v2691_v42, 1  ;;  %v2708_v60 = vsel %vm261_vm0, %v285_v33, %v286_v38  ;;  %v2711_v61 = vsel %vm261_vm0, 0.0, %v285_v33  ;;  %v217_v26 = vld [vmem:[%s2540_s5 + $0xa8] sm:$0xff] }
  0x2d   : > { %4517 = vst [vmem:[#allocation19_spill] sm:$0xff] %v2704_v55  ;;  %4518 = vst [vmem:[#allocation20_spill] sm:$0xff] %v2708_v60  ;;  %v2714_v62 = vsel %vm261_vm0, %v286_v38, 0.0  ;;  %v2718_v0 = vsel %vm427_vm1, %v463_v44, %v464_v47  ;;  %v291_v4 = vrot.slane %v214_v54, 7  ;;  %v468_v5 = vrot.slane %v2711_v61, 1 }
  0x2e   : > { %4519 = vst [vmem:[#allocation21_spill] sm:$0xff] %v2711_v61  ;;  %4520 = vst [vmem:[#allocation22_spill] sm:$0xff] %v2718_v0  ;;  %v469_v8 = vrot.slane %v2708_v60, 1  ;;  %v2727_v9 = vsel %vm261_vm0, %v288_v49, %v289_v50  ;;  %v2730_v11 = vsel %vm261_vm0, 0.0, %v288_v49  ;;  %v2733_v13 = vsel %vm427_vm1, %v464_v47, %v466_v58 }
  0x2f   : > { %4521 = vst [vmem:[#allocation23_spill] sm:$0xff] %v2727_v9  ;;  %4522 = vst [vmem:[#allocation24_spill] sm:$0xff] %v2730_v11  ;;  %v471_v16 = vrot.slane %v2714_v62, 1  ;;  %v2737_v19 = vsel %vm261_vm0, %v289_v50, 0.0  ;;  %v292_v20 = vrot.slane %v215_v63, 7  ;;  %v510_v31 = vrot.slane %v2523_v1, 2 }
  0x30   : > { %621 = vrot.lane.b32.xlu1 %v2675_v22, %s2440_s6  ;;  %623 = vrot.lane.b32.xlu0 %v2685_v29, %s2440_s6  ;;  %4523 = vst [vmem:[#allocation25_spill] sm:$0xff] %v2733_v13  ;;  %v512_v33 = vrot.slane %v2532_v3, 2  ;;  %v473_v38 = vrot.slane %v2730_v11, 1  ;;  %v474_v39 = vrot.slane %v2727_v9, 1  ;;  %v509_v40 = vrot.slane %v2528_v2, 2  ;;  %v225_v29 = vld [vmem:[%s2540_s5 + $0xe8] sm:$0xff] }
  0x31   : > { %v2751_v44 = vsel %vm427_vm1, %v468_v5, %v469_v8  ;;  %v476_v47 = vrot.slane %v2737_v19, 1  ;;  %v2755_v49 = vsel %vm261_vm0, 0.0, %v291_v4  ;;  %v294_v3 = vrot.slane %v216_v21, 7  ;;  %v219_v5 = vld [vmem:[%s2540_s5 + $0xb8] sm:$0xff] }
  0x32   : > { %4524 = vst [vmem:[#allocation26_spill] sm:$0xff] %v2751_v44  ;;  %v2758_v50 = vsel %vm427_vm1, %v469_v8, %v471_v16  ;;  %v2761_v54 = vsel %vm261_vm0, %v291_v4, %v292_v20  ;;  %v2764_v58 = vsel %vm261_vm0, %v292_v20, 0.0  ;;  %v295_v63 = vrot.slane %v217_v26, 7 }
  0x33   : > { %4525 = vst [vmem:[#allocation27_spill] sm:$0xff] %v2758_v50  ;;  %v2769_v1 = vsel %vm427_vm1, %v473_v38, %v474_v39  ;;  %v478_v2 = vrot.slane %v2755_v49, 1  ;;  %v511_v21 = vsel %vm508_vm2, %v509_v40, %v510_v31  ;;  %v513_v8 = vsel %vm508_vm2, %v510_v31, %v512_v33 }
  0x34   : > { %625 = vrot.lane.b32.xlu1 %v2700_v48, %s2440_s6  ;;  %627 = vrot.lane.b32.xlu0 %v2704_v55, %s2440_s6  ;;  %4526 = vst [vmem:[#allocation28_spill] sm:$0xff] %v2769_v1  ;;  %v2779_v4 = vsel %vm427_vm1, %v474_v39, %v476_v47  ;;  %v479_v16 = vrot.slane %v2761_v54, 1  ;;  %v481_v20 = vrot.slane %v2764_v58, 1  ;;  %v2784_v26 = vsel %vm261_vm0, 0.0, %v294_v3  ;;  %v224_v48 = vld [vmem:[%s2540_s5 + $0xe0] sm:$0xff] }
  0x35   : > { %4527 = vst [vmem:[#allocation29_spill] sm:$0xff] %v2779_v4  ;;  %v2787_v38 = vsel %vm261_vm0, %v294_v3, %v295_v63  ;;  %v2790_v31 = vsel %vm261_vm0, %v295_v63, 0.0  ;;  %v297_v33 = vrot.slane %v218_v12, 7  ;;  %v298_v40 = vrot.slane %v219_v5, 7 }
  0x36   : > { %v2793_v39 = vpack.i.bf16 %v513_v8, %v511_v21  ;;  %v483_v47 = vrot.slane %v2784_v26, 1  ;;  %v2802_v3 = vsel %vm427_vm1, %v478_v2, %v479_v16  ;;  %v2805_v12 = vsel %vm427_vm1, %v479_v16, %v481_v20  ;;  %v223_v16 = vld [vmem:[%s2540_s5 + $0xd8] sm:$0xff] }
  0x37   : > { %4529 = vst [vmem:[#allocation31_spill] sm:$0xff] %v2802_v3  ;;  %4530 = vst [vmem:[#allocation32_spill] sm:$0xff] %v2805_v12  ;;  %v484_v63 = vrot.slane %v2787_v38, 1  ;;  %v486_v5 = vrot.slane %v2790_v31, 1  ;;  %v2810_v21 = vsel %vm261_vm0, %v297_v33, %v298_v40  ;;  %v2813_v8 = vsel %vm261_vm0, 0.0, %v297_v33 }
  0x38   : > { %629 = vrot.lane.b32.xlu1 %v2718_v0, %s2440_s6  ;;  %631 = vrot.lane.b32.xlu0 %v2733_v13, %s2440_s6  ;;  %4528 = vst [vmem:[#allocation30_spill] sm:$0xff] %v2793_v39  ;;  %v222_v13 = vld [vmem:[%s2540_s5 + $0xd0] sm:$0xff]  ;;  %v488_v33 = vrot.slane %v2813_v8, 1  ;;  %v489_v0 = vrot.slane %v2810_v21, 1 }
  0x39   : > { %v2825_v20 = vsel %vm427_vm1, %v483_v47, %v484_v63  ;;  %v303_v55 = vrot.slane %v222_v13, 7 }
  0x3a   : > { %4531 = vst [vmem:[#allocation33_spill] sm:$0xff] %v2825_v20 }
  0x3c   : > { %633 = vrot.lane.b32.xlu1 %v2751_v44, %s2440_s6  ;;  %635 = vrot.lane.b32.xlu0 %v2758_v50, %s2440_s6  ;;  %v220_v50 = vld [vmem:[%s2540_s5 + $0xc0] sm:$0xff]  ;;  %v221_v44 = vld [vmem:[%s2540_s5 + $0xc8] sm:$0xff] }
  0x3d   : > { %v301_v2 = vrot.slane %v221_v44, 7  ;;  %v2831_v44 = vsel %vm427_vm1, %v484_v63, %v486_v5  ;;  %v2849_v63 = vsel %vm427_vm1, %v488_v33, %v489_v0  ;;  %v307_v33 = vrot.slane %v225_v29, 7 }
  0x3e   : > { %4532 = vst [vmem:[#allocation34_spill] sm:$0xff] %v2831_v44  ;;  %4533 = vst [vmem:[#allocation35_spill] sm:$0xff] %v2849_v63 }
  0x3f   : > { %v2841_v47 = vsel %vm261_vm0, %v301_v2, 0.0 }
  0x40   : > { %637 = vrot.lane.b32.xlu1 %v2769_v1, %s2440_s6  ;;  %639 = vrot.lane.b32.xlu0 %v2779_v4, %s2440_s6  ;;  %v2816_v1 = vsel %vm261_vm0, %v298_v40, 0.0  ;;  %v300_v4 = vrot.slane %v220_v50, 7 }
  0x41   : > { %v491_v40 = vrot.slane %v2816_v1, 1 }
  0x42   : > { %v2834_v50 = vsel %vm261_vm0, 0.0, %v300_v4 }
  0x43   : > { %v2852_v13 = vsel %vm427_vm1, %v489_v0, %v491_v40  ;;  %v493_v5 = vrot.slane %v2834_v50, 1 }
  0x44   : > { %641 = vrot.lane.b32.xlu1 %v2802_v3, %s2440_s6  ;;  %643 = vrot.lane.b32.xlu0 %v2805_v12, %s2440_s6  ;;  %v304_v3 = vrot.slane %v223_v16, 7  ;;  %v2838_v12 = vsel %vm261_vm0, %v300_v4, %v301_v2  ;;  %4534 = vst [vmem:[#allocation36_spill] sm:$0xff] %v2852_v13  ;;  %v306_v4 = vrot.slane %v224_v48, 7  ;;  %v496_v2 = vrot.slane %v2841_v47, 1 }
  0x45   : > { %v494_v16 = vrot.slane %v2838_v12, 1 }
  0x46   : > { %v2858_v22 = vsel %vm261_vm0, %v303_v55, %v304_v3  ;;  %v2880_v29 = vsel %vm261_vm0, 0.0, %v306_v4 }
  0x47   : > { %4535 = vst [vmem:[#allocation37_spill] sm:$0xff] %v2858_v22  ;;  %v499_v0 = vrot.slane %v2858_v22, 1  ;;  %v2873_v40 = vsel %vm427_vm1, %v493_v5, %v494_v16  ;;  %4539 = vst [vmem:[#allocation41_spill] sm:$0xff] %v2880_v29  ;;  %v503_v5 = vrot.slane %v2880_v29, 1 }
  0x48   : > { %645 = vrot.lane.b32.xlu1 %v2825_v20, %s2440_s6  ;;  %647 = vrot.lane.b32.xlu0 %v2831_v44, %s2440_s6  ;;  %v2861_v20 = vsel %vm261_vm0, 0.0, %v303_v55  ;;  %v2864_v44 = vsel %vm261_vm0, %v304_v3, 0.0  ;;  %4537 = vst [vmem:[#allocation39_spill] sm:$0xff] %v2873_v40  ;;  %v2876_v55 = vsel %vm427_vm1, %v494_v16, %v496_v2 }
  0x49   : > { %4536 = vst [vmem:[#allocation38_spill] sm:$0xff] %v2861_v20  ;;  %v498_v48 = vrot.slane %v2861_v20, 1  ;;  %4538 = vst [vmem:[#allocation40_spill] sm:$0xff] %v2876_v55  ;;  %v501_v3 = vrot.slane %v2864_v44, 1 }
  0x4b   : > { %v2894_v16 = vsel %vm427_vm1, %v498_v48, %v499_v0  ;;  %v2897_v2 = vsel %vm427_vm1, %v499_v0, %v501_v3  ;;  %v514_v48 = vrot.slane %v2562_v25, 2  ;;  %v515_v0 = vrot.slane %v2556_v23, 2 }
  0x4c   : > { %649 = vrot.lane.b32.xlu1 %v2849_v63, %s2440_s6  ;;  %651 = vrot.lane.b32.xlu0 %v2852_v13, %s2440_s6  ;;  %v2883_v63 = vsel %vm261_vm0, %v306_v4, %v307_v33  ;;  %v2886_v13 = vsel %vm261_vm0, %v307_v33, 0.0  ;;  %4541 = vst [vmem:[#allocation43_spill] sm:$0xff] %v2894_v16  ;;  %4542 = vst [vmem:[#allocation44_spill] sm:$0xff] %v2897_v2 }
  0x4d   : > { %4540 = vst [vmem:[#allocation42_spill] sm:$0xff] %v2883_v63  ;;  %v504_v4 = vrot.slane %v2883_v63, 1  ;;  %v506_v15 = vrot.slane %v2886_v13, 1  ;;  %v2918_v3 = vsel %vm508_vm2, %v514_v48, %v515_v0 }
  0x4e   : > { %4545 = vst [vmem:[#allocation47_spill] sm:$0xff] %v2918_v3 }
  0x4f   : > { %v2906_v33 = vsel %vm427_vm1, %v503_v5, %v504_v4  ;;  %v519_v5 = vrot.slane %v2572_v32, 2 }
  0x50   : > { %653 = vrot.lane.b32.xlu1 %v2873_v40, %s2440_s6  ;;  %655 = vrot.lane.b32.xlu0 %v2876_v55, %s2440_s6  ;;  %4543 = vst [vmem:[#allocation45_spill] sm:$0xff] %v2906_v33  ;;  %v2909_v55 = vsel %vm427_vm1, %v504_v4, %v506_v15  ;;  %v520_v15 = vrot.slane %v2568_v30, 2  ;;  %v522_v4 = vrot.slane %v2576_v34, 2 }
  0x51   : > { %4544 = vst [vmem:[#allocation46_spill] sm:$0xff] %v2909_v55 }
  0x52   : > { %v2932_v48 = vsel %vm508_vm2, %v519_v5, %v520_v15  ;;  %v530_v5 = vrot.slane %v2612_v51, 2 }
  0x53   : > { %4547 = vst [vmem:[#allocation49_spill] sm:$0xff] %v2932_v48 }
  0x54   : > { %657 = vrot.lane.b32.xlu1 %v2894_v16, %s2440_s6  ;;  %659 = vrot.lane.b32.xlu0 %v2897_v2, %s2440_s6  ;;  %v517_v2 = vrot.slane %v2559_v24, 2  ;;  %v524_v24 = vrot.slane %v2595_v41, 2 }
  0x58   : > { %661 = vrot.lane.b32.xlu1 %v2906_v33, %s2440_s6  ;;  %663 = vrot.lane.b32.xlu0 %v2909_v55, %s2440_s6  ;;  %v2929_v55 = vsel %vm508_vm2, %v515_v0, %v517_v2  ;;  %v525_v33 = vrot.slane %v2579_v35, 2  ;;  %v527_v2 = vrot.slane %v2599_v43, 2  ;;  %v529_v0 = vrot.slane %v2615_v52, 2  ;;  %s2447_s6 = smov 32  }
  0x59   : > { %4546 = vst [vmem:[#allocation48_spill] sm:$0xff] %v2929_v55  ;;  %v534_v43 = vrot.slane %v2632_v59, 2 }
  0x5a   : > { %v2944_v34 = vsel %vm508_vm2, %v524_v24, %v525_v33  ;;  %v535_v24 = vrot.slane %v2640_v6, 2 }
  0x5b   : > { %4549 = vst [vmem:[#allocation51_spill] sm:$0xff] %v2944_v34 }
  0x5c   : > { %2358 = vrot.lane.b32.xlu1 %v2793_v39, %s2441_s7  ;;  %701 = vrot.lane.b32.xlu0 %v2918_v3, %s2441_s7  ;;  %v2941_v39 = vsel %vm508_vm2, %v520_v15, %v522_v4  ;;  %v2955_v15 = vsel %vm508_vm2, %v525_v33, %v527_v2  ;;  %v2958_v4 = vsel %vm508_vm2, %v529_v0, %v530_v5  ;;  %v539_v2 = vrot.slane %v2652_v10, 2 }
  0x5d   : > { %4548 = vst [vmem:[#allocation50_spill] sm:$0xff] %v2941_v39  ;;  %4550 = vst [vmem:[#allocation52_spill] sm:$0xff] %v2955_v15  ;;  %v2971_v33 = vsel %vm508_vm2, %v534_v43, %v535_v24  ;;  %v540_v0 = vrot.slane %v2662_v17, 2  ;;  %v545_v43 = vrot.slane %v2679_v27, 2 }
  0x5e   : > { %4551 = vst [vmem:[#allocation53_spill] sm:$0xff] %v2958_v4  ;;  %4553 = vst [vmem:[#allocation55_spill] sm:$0xff] %v2971_v33 }
  0x60   : > { %703 = vrot.lane.b32.xlu1 %v2929_v55, %s2441_s7  ;;  %705 = vrot.lane.b32.xlu0 %v2932_v48, %s2441_s7  ;;  %v532_v48 = vrot.slane %v2618_v53, 2 }
  0x62   : > { %v2968_v53 = vsel %vm508_vm2, %v530_v5, %v532_v48  ;;  %v2984_v48 = vsel %vm508_vm2, %v539_v2, %v540_v0  ;;  %v544_v5 = vrot.slane %v2682_v28, 2  ;;  %v550_v2 = vrot.slane %v2708_v60, 2 }
  0x63   : > { %4552 = vst [vmem:[#allocation54_spill] sm:$0xff] %v2968_v53  ;;  %4555 = vst [vmem:[#allocation57_spill] sm:$0xff] %v2984_v48 }
  0x64   : > { %707 = vrot.lane.b32.xlu1 %v2941_v39, %s2441_s7  ;;  %709 = vrot.lane.b32.xlu0 %v2944_v34, %s2441_s7  ;;  %v537_v34 = vrot.slane %v2643_v7, 2 }
  0x66   : > { %v2981_v7 = vsel %vm508_vm2, %v535_v24, %v537_v34  ;;  %v547_v34 = vrot.slane %v2691_v42, 2  ;;  %v549_v24 = vrot.slane %v2711_v61, 2  ;;  %v554_v42 = vrot.slane %v2730_v11, 2 }
  0x67   : > { %4554 = vst [vmem:[#allocation56_spill] sm:$0xff] %v2981_v7 }
  0x68   : > { %711 = vrot.lane.b32.xlu1 %v2955_v15, %s2441_s7  ;;  %713 = vrot.lane.b32.xlu0 %v2958_v4, %s2441_s7  ;;  %v542_v4 = vrot.slane %v2665_v18, 2  ;;  %v2996_v18 = vsel %vm508_vm2, %v544_v5, %v545_v43  ;;  %v555_v5 = vrot.slane %v2727_v9, 2 }
  0x69   : > { %4557 = vst [vmem:[#allocation59_spill] sm:$0xff] %v2996_v18 }
  0x6c   : > { %715 = vrot.lane.b32.xlu1 %v2968_v53, %s2441_s7  ;;  %717 = vrot.lane.b32.xlu0 %v2971_v33, %s2441_s7  ;;  %v2993_v33 = vsel %vm508_vm2, %v540_v0, %v542_v4  ;;  %v3007_v4 = vsel %vm508_vm2, %v545_v43, %v547_v34  ;;  %v3010_v0 = vsel %vm508_vm2, %v549_v24, %v550_v2  ;;  %v559_v34 = vrot.slane %v2755_v49, 2 }
  0x6d   : > { %4556 = vst [vmem:[#allocation58_spill] sm:$0xff] %v2993_v33  ;;  %4558 = vst [vmem:[#allocation60_spill] sm:$0xff] %v3007_v4  ;;  %v3023_v43 = vsel %vm508_vm2, %v554_v42, %v555_v5  ;;  %v560_v24 = vrot.slane %v2761_v54, 2  ;;  %v565_v42 = vrot.slane %v2787_v38, 2 }
  0x6e   : > { %4559 = vst [vmem:[#allocation61_spill] sm:$0xff] %v3010_v0  ;;  %4561 = vst [vmem:[#allocation63_spill] sm:$0xff] %v3023_v43 }
  0x70   : > { %719 = vrot.lane.b32.xlu1 %v2981_v7, %s2441_s7  ;;  %721 = vrot.lane.b32.xlu0 %v2984_v48, %s2441_s7  ;;  %v552_v48 = vrot.slane %v2714_v62, 2  ;;  %v582_v7 = vrot.slane %v2864_v44, 2 }
  0x72   : > { %v3020_v62 = vsel %vm508_vm2, %v550_v2, %v552_v48  ;;  %v3036_v48 = vsel %vm508_vm2, %v559_v34, %v560_v24  ;;  %v564_v2 = vrot.slane %v2784_v26, 2  ;;  %v570_v34 = vrot.slane %v2810_v21, 2 }
  0x73   : > { %4560 = vst [vmem:[#allocation62_spill] sm:$0xff] %v3020_v62  ;;  %4563 = vst [vmem:[#allocation65_spill] sm:$0xff] %v3036_v48 }
  0x74   : > { %723 = vrot.lane.b32.xlu1 %v2993_v33, %s2441_s7  ;;  %725 = vrot.lane.b32.xlu0 %v2996_v18, %s2441_s7  ;;  %v557_v18 = vrot.slane %v2737_v19, 2  ;;  %v577_v33 = vrot.slane %v2841_v47, 2 }
  0x76   : > { %v3033_v19 = vsel %vm508_vm2, %v555_v5, %v557_v18  ;;  %v567_v18 = vrot.slane %v2790_v31, 2  ;;  %v569_v5 = vrot.slane %v2813_v8, 2  ;;  %v574_v31 = vrot.slane %v2834_v50, 2 }
  0x77   : > { %4562 = vst [vmem:[#allocation64_spill] sm:$0xff] %v3033_v19 }
  0x78   : > { %727 = vrot.lane.b32.xlu1 %v3007_v4, %s2441_s7  ;;  %729 = vrot.lane.b32.xlu0 %v3010_v0, %s2441_s7  ;;  %v562_v0 = vrot.slane %v2764_v58, 2  ;;  %v3048_v58 = vsel %vm508_vm2, %v564_v2, %v565_v42  ;;  %v572_v4 = vrot.slane %v2816_v1, 2  ;;  %v575_v2 = vrot.slane %v2838_v12, 2 }
  0x79   : > { %4565 = vst [vmem:[#allocation67_spill] sm:$0xff] %v3048_v58 }
  0x7a   : > { %v3072_v1 = vsel %vm508_vm2, %v570_v34, %v572_v4  ;;  %v3085_v47 = vsel %vm508_vm2, %v575_v2, %v577_v33 }
  0x7b   : > { %4568 = vst [vmem:[#allocation70_spill] sm:$0xff] %v3072_v1  ;;  %4570 = vst [vmem:[#allocation72_spill] sm:$0xff] %v3085_v47 }
  0x7c   : > { %731 = vrot.lane.b32.xlu1 %v3020_v62, %s2441_s7  ;;  %733 = vrot.lane.b32.xlu0 %v3023_v43, %s2441_s7  ;;  %v3045_v62 = vsel %vm508_vm2, %v560_v24, %v562_v0  ;;  %v3059_v0 = vsel %vm508_vm2, %v565_v42, %v567_v18  ;;  %v3062_v24 = vsel %vm508_vm2, %v569_v5, %v570_v34  ;;  %v579_v18 = vrot.slane %v2861_v20, 2 }
  0x7d   : > { %4564 = vst [vmem:[#allocation66_spill] sm:$0xff] %v3045_v62  ;;  %4566 = vst [vmem:[#allocation68_spill] sm:$0xff] %v3059_v0  ;;  %v3075_v42 = vsel %vm508_vm2, %v574_v31, %v575_v2  ;;  %v580_v5 = vrot.slane %v2858_v22, 2  ;;  %v584_v34 = vrot.slane %v2880_v29, 2  ;;  %v585_v31 = vrot.slane %v2883_v63, 2 }
  0x7e   : > { %4567 = vst [vmem:[#allocation69_spill] sm:$0xff] %v3062_v24  ;;  %4569 = vst [vmem:[#allocation71_spill] sm:$0xff] %v3075_v42  ;;  %v587_v2 = vrot.slane %v2886_v13, 2 }
  0x7f   : > { %v3088_v4 = vsel %vm508_vm2, %v579_v18, %v580_v5  ;;  %v3099_v44 = vsel %vm508_vm2, %v580_v5, %v582_v7  ;;  %v3102_v33 = vsel %vm508_vm2, %v584_v34, %v585_v31 }
  0x80   : > { %735 = vrot.lane.b32.xlu1 %v3033_v19, %s2441_s7  ;;  %737 = vrot.lane.b32.xlu0 %v3036_v48, %s2441_s7  ;;  %4571 = vst [vmem:[#allocation73_spill] sm:$0xff] %v3088_v4  ;;  %4573 = vst [vmem:[#allocation75_spill] sm:$0xff] %v3099_v44  ;;  %v3234_v19 = vld [vmem:[%s2540_s5 + $0xf8] sm:$0xff] }
  0x81   : > { %4574 = vst [vmem:[#allocation76_spill] sm:$0xff] %v3102_v33  ;;  %v4486_v39 = vrot.slane %v3234_v19, 7 }
  0x84   : > { %739 = vrot.lane.b32.xlu1 %v3045_v62, %s2441_s7  ;;  %741 = vrot.lane.b32.xlu0 %v3048_v58, %s2441_s7  ;;  %v226_v58 = vld [vmem:[%s2540_s5 + $0xf0] sm:$0xff]  ;;  %s2383_s5 = scalar_lea.vmem %s2382_s30, 512 }
  0x85   : > { %v309_v62 = vrot.slane %v226_v58, 7 }
  0x87   : > { %v3241_v43 = vsel %vm261_vm0, 0.0, %v309_v62 }
  0x88   : > { %743 = vrot.lane.b32.xlu1 %v3059_v0, %s2441_s7  ;;  %745 = vrot.lane.b32.xlu0 %v3062_v24, %s2441_s7  ;;  %4585 = vst [vmem:[#allocation87_spill] sm:$0xff] %v3241_v43 }
  0x8c   : > { %747 = vrot.lane.b32.xlu1 %v3072_v1, %s2441_s7  ;;  %749 = vrot.lane.b32.xlu0 %v3075_v42, %s2441_s7 }
  0x8e   : > { %v3092_v53 = vpop.permute.xlu0 %2353 }
  0x8f   : > { %4572 = vst [vmem:[#allocation74_spill] sm:$0xff] %v3092_v53 }
  0x90   : > { %751 = vrot.lane.b32.xlu1 %v3085_v47, %s2441_s7  ;;  %753 = vrot.lane.b32.xlu0 %v3088_v4, %s2441_s7  ;;  %v3114_v4 = vsel %vm508_vm2, %v585_v31, %v587_v2 }
  0x91   : > { %4577 = vst [vmem:[#allocation79_spill] sm:$0xff] %v3114_v4 }
  0x92   : > { %v3105_v18 = vpop.permute.xlu1 %607  ;;  %v3107_v42 = vpop.permute.xlu0 %605 }
  0x93   : > { %4575 = vst [vmem:[#allocation77_spill] sm:$0xff] %v3105_v18  ;;  %4576 = vst [vmem:[#allocation78_spill] sm:$0xff] %v3107_v42 }
  0x94   : > { %755 = vrot.lane.b32.xlu1 %v3099_v44, %s2441_s7  ;;  %757 = vrot.lane.b32.xlu0 %v3102_v33, %s2441_s7 }
  0x96   : > { %v3116_v7 = vpop.permute.xlu1 %609  ;;  %v3118_v5 = vpop.permute.xlu0 %611 }
  0x97   : > { %4578 = vst [vmem:[#allocation80_spill] sm:$0xff] %v3116_v7 }
  0x98   : > { %759 = vrot.lane.b32.xlu1 %v3114_v4, %s2441_s7  ;;  %793 = vrot.lane.b32.xlu0 %v2562_v25, %s2442_s8 }
  0x9a   : > { %v3124_v13 = vpop.permute.xlu1 %613  ;;  %v3126_v34 = vpop.permute.xlu0 %615 }
  0x9c   : > { %795 = vrot.lane.b32.xlu1 %v2556_v23, %s2442_s8  ;;  %797 = vrot.lane.b32.xlu0 %v2572_v32, %s2442_s8 }
  0x9e   : > { %v3132_v31 = vpop.permute.xlu1 %617  ;;  %v3134_v2 = vpop.permute.xlu0 %619 }
  0xa0   : > { %799 = vrot.lane.b32.xlu1 %v2568_v30, %s2442_s8  ;;  %801 = vrot.lane.b32.xlu0 %v2595_v41, %s2442_s8 }
  0xa2   : > { %v3140_v4 = vpop.permute.xlu1 %621  ;;  %v3142_v7 = vpop.permute.xlu0 %623 }
  0xa4   : > { %803 = vrot.lane.b32.xlu1 %v2579_v35, %s2442_s8  ;;  %805 = vrot.lane.b32.xlu0 %v2615_v52, %s2442_s8 }
  0xa6   : > { %v3148_v33 = vpop.permute.xlu1 %625  ;;  %v3150_v23 = vpop.permute.xlu0 %627 }
  0xa8   : > { %807 = vrot.lane.b32.xlu1 %v2612_v51, %s2442_s8  ;;  %809 = vrot.lane.b32.xlu0 %v2632_v59, %s2442_s8 }
  0xaa   : > { %v3156_v18 = vpop.permute.xlu1 %629  ;;  %v3158_v44 = vpop.permute.xlu0 %631 }
  0xac   : > { %811 = vrot.lane.b32.xlu1 %v2640_v6, %s2442_s8  ;;  %813 = vrot.lane.b32.xlu0 %v2652_v10, %s2442_s8 }
  0xae   : > { %v3164_v25 = vpop.permute.xlu1 %633  ;;  %v3166_v42 = vpop.permute.xlu0 %635 }
  0xaf   : > { %4579 = vst [vmem:[#allocation81_spill] sm:$0xff] %v3164_v25  ;;  %4580 = vst [vmem:[#allocation82_spill] sm:$0xff] %v3166_v42 }
  0xb0   : > { %815 = vrot.lane.b32.xlu1 %v2662_v17, %s2442_s8  ;;  %817 = vrot.lane.b32.xlu0 %v2682_v28, %s2442_s8 }
  0xb2   : > { %v3172_v47 = vpop.permute.xlu1 %637  ;;  %v3174_v53 = vpop.permute.xlu0 %639 }
  0xb3   : > { %4581 = vst [vmem:[#allocation83_spill] sm:$0xff] %v3172_v47  ;;  %4582 = vst [vmem:[#allocation84_spill] sm:$0xff] %v3174_v53 }
  0xb4   : > { %819 = vrot.lane.b32.xlu1 %v2679_v27, %s2442_s8  ;;  %821 = vrot.lane.b32.xlu0 %v2711_v61, %s2442_s8 }
  0xb6   : > { %v3180_v1 = vpop.permute.xlu1 %641  ;;  %v3182_v25 = vpop.permute.xlu0 %643 }
  0xb8   : > { %823 = vrot.lane.b32.xlu1 %v2708_v60, %s2442_s8  ;;  %825 = vrot.lane.b32.xlu0 %v2730_v11, %s2442_s8 }
  0xba   : > { %v3188_v42 = vpop.permute.xlu1 %645  ;;  %v3190_v47 = vpop.permute.xlu0 %647 }
  0xbc   : > { %827 = vrot.lane.b32.xlu1 %v2727_v9, %s2442_s8  ;;  %829 = vrot.lane.b32.xlu0 %v2755_v49, %s2442_s8 }
  0xbe   : > { %v3196_v53 = vpop.permute.xlu1 %649  ;;  %v3198_v61 = vpop.permute.xlu0 %651 }
  0xc0   : > { %831 = vrot.lane.b32.xlu1 %v2761_v54, %s2442_s8  ;;  %833 = vrot.lane.b32.xlu0 %v2784_v26, %s2442_s8 }
  0xc2   : > { %v3204_v11 = vpop.permute.xlu1 %653  ;;  %v3206_v60 = vpop.permute.xlu0 %655 }
  0xc4   : > { %835 = vrot.lane.b32.xlu1 %v2787_v38, %s2442_s8  ;;  %837 = vrot.lane.b32.xlu0 %v2813_v8, %s2442_s8 }
  0xc6   : > { %v3212_v9 = vpop.permute.xlu1 %657  ;;  %v3214_v24 = vpop.permute.xlu0 %659 }
  0xc8   : > { %839 = vrot.lane.b32.xlu1 %v2810_v21, %s2442_s8  ;;  %841 = vrot.lane.b32.xlu0 %v2834_v50, %s2442_s8 }
  0xca   : > { %v3220_v0 = vpop.permute.xlu1 %661  ;;  %v3222_v15 = vpop.permute.xlu0 %663 }
  0xcc   : > { %843 = vrot.lane.b32.xlu1 %v2838_v12, %s2442_s8  ;;  %845 = vrot.lane.b32.xlu0 %v2861_v20, %s2442_s8 }
  0xce   : > { %v3229_v48 = vpop.permute.xlu1 %2358  ;;  %v3231_v32 = vpop.permute.xlu0 %701 }
  0xcf   : > { %4583 = vst [vmem:[#allocation85_spill] sm:$0xff] %v3229_v48  ;;  %4584 = vst [vmem:[#allocation86_spill] sm:$0xff] %v3231_v32  ;;  %v3255_v32 = vsel %vm261_vm0, %v309_v62, %v4486_v39  ;;  %v1375_v48 = vsel %vm1369_vm3, %v2568_v30, %v3118_v5  ;;  %v1377_v62 = vsel %vm1369_vm3, %v2579_v35, %v3126_v34 }
  0xd0   : > { %847 = vrot.lane.b32.xlu1 %v2858_v22, %s2442_s8  ;;  %849 = vrot.lane.b32.xlu0 %v2880_v29, %s2442_s8  ;;  %4588 = vst [vmem:[#allocation90_spill] sm:$0xff] %v3255_v32  ;;  %v1378_v5 = vsel %vm1369_vm3, %v2615_v52, %v3132_v31  ;;  %v1380_v34 = vsel %vm1369_vm3, %v2632_v59, %v3140_v4 }
  0xd1   : > { %v1382_v4 = vsel %vm1369_vm3, %v2652_v10, %v3148_v33  ;;  %v1384_v33 = vsel %vm1369_vm3, %v2682_v28, %v3156_v18  ;;  %v4596_v28 = vld [vmem:[#allocation19_spill] sm:$0xff] }
  0xd2   : > { %v3244_v55 = vpop.permute.xlu1 %703  ;;  %v3246_v58 = vpop.permute.xlu0 %705  ;;  %v4608_v10 = vld [vmem:[#allocation35_spill] sm:$0xff] }
  0xd3   : > { %4586 = vst [vmem:[#allocation88_spill] sm:$0xff] %v3244_v55  ;;  %4587 = vst [vmem:[#allocation89_spill] sm:$0xff] %v3246_v58  ;;  %v1376_v58 = vsel %vm1369_vm3, %v2595_v41, %v3124_v13 }
  0xd4   : > { %851 = vrot.lane.b32.xlu1 %v2883_v63, %s2442_s8  ;;  %853 = vrot.lane.b32.xlu0 %v3241_v43, %s2442_s8 }
  0xd6   : > { %v708_v55 = vpop.permute.xlu1 %707  ;;  %v710_v3 = vpop.permute.xlu0 %709 }
  0xd7   : > { %v3264_v16 = vsel %vm1402_vm4, %v1375_v48, %v708_v55  ;;  %v3267_v43 = vsel %vm1402_vm4, %v1376_v58, %v710_v3 }
  0xd8   : > { %855 = vrot.lane.b32.xlu1 %v3255_v32, %s2442_s8  ;;  %889 = vrot.lane.b32.xlu0 %v2585_v37, %s2443_s9  ;;  %v1379_v37 = vsel %vm1369_vm3, %v2612_v51, %v3134_v2 }
  0xda   : > { %v712_v55 = vpop.permute.xlu1 %711  ;;  %v714_v48 = vpop.permute.xlu0 %713 }
  0xdb   : > { %v3280_v3 = vsel %vm1402_vm4, %v1377_v62, %v712_v55  ;;  %v3283_v13 = vsel %vm1402_vm4, %v1378_v5, %v714_v48 }
  0xdc   : > { %891 = vrot.lane.b32.xlu1 %v2582_v36, %s2443_s9  ;;  %893 = vrot.lane.b32.xlu0 %v2602_v45, %s2443_s9  ;;  %v1381_v36 = vsel %vm1369_vm3, %v2640_v6, %v3142_v7  ;;  %v1383_v7 = vsel %vm1369_vm3, %v2662_v17, %v3150_v23  ;;  %v1385_v23 = vsel %vm1369_vm3, %v2679_v27, %v3158_v44  ;;  %v4597_v44 = vld [vmem:[#allocation22_spill] sm:$0xff] }
  0xde   : > { %v716_v31 = vpop.permute.xlu1 %715  ;;  %v718_v58 = vpop.permute.xlu0 %717 }
  0xdf   : > { %v3296_v62 = vsel %vm1402_vm4, %v1379_v37, %v716_v31  ;;  %v3299_v5 = vsel %vm1402_vm4, %v1380_v34, %v718_v58 }
  0xe0   : > { %895 = vrot.lane.b32.xlu1 %v2605_v46, %s2443_s9  ;;  %897 = vrot.lane.b32.xlu0 %v2622_v56, %s2443_s9 }
  0xe2   : > { %v720_v2 = vpop.permute.xlu1 %719  ;;  %v722_v55 = vpop.permute.xlu0 %721 }
  0xe3   : > { %v3312_v48 = vsel %vm1402_vm4, %v1381_v36, %v720_v2  ;;  %v3315_v37 = vsel %vm1402_vm4, %v1382_v4, %v722_v55  ;;  %v4589_v4 = vld [vmem:[#allocation12_spill] sm:$0xff]  ;;  %v4590_v2 = vld [vmem:[#allocation14_spill] sm:$0xff] }
  0xe4   : > { %899 = vrot.lane.b32.xlu1 %v2629_v57, %s2443_s9  ;;  %901 = vrot.lane.b32.xlu0 %v2655_v14, %s2443_s9 }
  0xe6   : > { %v724_v34 = vpop.permute.xlu1 %723  ;;  %v726_v31 = vpop.permute.xlu0 %725 }
  0xe7   : > { %v3328_v58 = vsel %vm1402_vm4, %v1383_v7, %v724_v34  ;;  %v3331_v36 = vsel %vm1402_vm4, %v1384_v33, %v726_v31  ;;  %v4592_v7 = vld [vmem:[#allocation17_spill] sm:$0xff]  ;;  %v4593_v33 = vld [vmem:[#allocation18_spill] sm:$0xff] }
  0xe8   : > { %903 = vrot.lane.b32.xlu1 %v4589_v4, %s2443_s9  ;;  %905 = vrot.lane.b32.xlu0 %v4590_v2, %s2443_s9 }
  0xea   : > { %v728_v55 = vpop.permute.xlu1 %727  ;;  %v3340_v18 = vpop.permute.xlu0 %729 }
  0xeb   : > { %4591 = vst [vmem:[#allocation12_spill] sm:$0xff] %v3340_v18  ;;  %v3343_v39 = vsel %vm1402_vm4, %v1385_v23, %v728_v55  ;;  %v1390_v23 = vsel %vm1369_vm3, %v2755_v49, %v3180_v1  ;;  %v1392_v1 = vsel %vm1369_vm3, %v2784_v26, %v3188_v42  ;;  %v1394_v42 = vsel %vm1369_vm3, %v2813_v8, %v3196_v53 }
  0xec   : > { %907 = vrot.lane.b32.xlu1 %v4592_v7, %s2443_s9  ;;  %909 = vrot.lane.b32.xlu0 %v4593_v33, %s2443_s9  ;;  %v1396_v53 = vsel %vm1369_vm3, %v2834_v50, %v3204_v11  ;;  %v1398_v11 = vsel %vm1369_vm3, %v2861_v20, %v3212_v9  ;;  %v1400_v9 = vsel %vm1369_vm3, %v2880_v29, %v3220_v0  ;;  %v592_v7 = vrot.slane %v3255_v32, 1 }
  0xee   : > { %v3349_v34 = vpop.permute.xlu1 %731  ;;  %v3351_v31 = vpop.permute.xlu0 %733 }
  0xef   : > { %4594 = vst [vmem:[#allocation91_spill] sm:$0xff] %v3349_v34  ;;  %4595 = vst [vmem:[#allocation92_spill] sm:$0xff] %v3351_v31  ;;  %v4599_v34 = vld [vmem:[#allocation25_spill] sm:$0xff]  ;;  %v4600_v31 = vld [vmem:[#allocation26_spill] sm:$0xff] }
  0xf0   : > { %911 = vrot.lane.b32.xlu1 %v4596_v28, %s2443_s9  ;;  %913 = vrot.lane.b32.xlu0 %v4597_v44, %s2443_s9  ;;  %v1391_v44 = vsel %vm1369_vm3, %v2761_v54, %v3182_v25  ;;  %v1393_v25 = vsel %vm1369_vm3, %v2787_v38, %v3190_v47  ;;  %v1395_v47 = vsel %vm1369_vm3, %v2810_v21, %v3198_v61 }
  0xf1   : > { %v1397_v61 = vsel %vm1369_vm3, %v2838_v12, %v3206_v60  ;;  %v1399_v60 = vsel %vm1369_vm3, %v2858_v22, %v3214_v24  ;;  %v1401_v24 = vsel %vm1369_vm3, %v2883_v63, %v3222_v15  ;;  %v4615_v15 = vrot.slane %v3234_v19, 7  ;;  %v4621_v19 = vld [vmem:[#allocation46_spill] sm:$0xff] }
  0xf2   : > { %v3360_v55 = vpop.permute.xlu1 %735  ;;  %v738_v27 = vpop.permute.xlu0 %737 }
  0xf3   : > { %4598 = vst [vmem:[#allocation93_spill] sm:$0xff] %v3360_v55  ;;  %v3363_v18 = vsel %vm1402_vm4, %v1390_v23, %v738_v27  ;;  %v4601_v23 = vld [vmem:[#allocation27_spill] sm:$0xff]  ;;  %v3470_v63 = vsel %vm261_vm0, %v4615_v15, 0.0 }
  0xf4   : > { %915 = vrot.lane.b32.xlu1 %v4599_v34, %s2443_s9  ;;  %917 = vrot.lane.b32.xlu0 %v4600_v31, %s2443_s9  ;;  %v4602_v31 = vld [vmem:[#allocation28_spill] sm:$0xff]  ;;  %v594_v32 = vrot.slane %v3470_v63, 1 }
  0xf6   : > { %v740_v28 = vpop.permute.xlu1 %739  ;;  %v742_v55 = vpop.permute.xlu0 %741  ;;  %v3489_v15 = vsel %vm427_vm1, %v592_v7, %v594_v32 }
  0xf7   : > { %v3376_v33 = vsel %vm1402_vm4, %v1391_v44, %v740_v28  ;;  %v3379_v27 = vsel %vm1402_vm4, %v1392_v1, %v742_v55  ;;  %v4603_v1 = vld [vmem:[#allocation29_spill] sm:$0xff] }
  0xf8   : > { %919 = vrot.lane.b32.xlu1 %v4601_v23, %s2443_s9  ;;  %921 = vrot.lane.b32.xlu0 %v4602_v31, %s2443_s9  ;;  %v4604_v31 = vld [vmem:[#allocation31_spill] sm:$0xff] }
  0xfa   : > { %v744_v34 = vpop.permute.xlu1 %743  ;;  %v746_v28 = vpop.permute.xlu0 %745 }
  0xfb   : > { %v3392_v44 = vsel %vm1402_vm4, %v1393_v25, %v744_v34  ;;  %v3395_v55 = vsel %vm1402_vm4, %v1394_v42, %v746_v28  ;;  %v4605_v28 = vld [vmem:[#allocation32_spill] sm:$0xff] }
  0xfc   : > { %923 = vrot.lane.b32.xlu1 %v4603_v1, %s2443_s9  ;;  %925 = vrot.lane.b32.xlu0 %v4604_v31, %s2443_s9  ;;  %v4606_v1 = vld [vmem:[#allocation33_spill] sm:$0xff] }
  0xfd   : > { %4616 = vst [vmem:[#allocation33_spill] sm:$0xff] %v3470_v63 }
  0xfe   : > { %v748_v23 = vpop.permute.xlu1 %747  ;;  %v750_v34 = vpop.permute.xlu0 %749 }
  0xff   : > { %v3408_v25 = vsel %vm1402_vm4, %v1395_v47, %v748_v23  ;;  %v3411_v42 = vsel %vm1402_vm4, %v1396_v53, %v750_v34  ;;  %v4607_v34 = vld [vmem:[#allocation34_spill] sm:$0xff] }
 0x100   : > { %927 = vrot.lane.b32.xlu1 %v4605_v28, %s2443_s9  ;;  %929 = vrot.lane.b32.xlu0 %v4606_v1, %s2443_s9 }
 0x102   : > { %v752_v17 = vpop.permute.xlu1 %751  ;;  %v754_v23 = vpop.permute.xlu0 %753 }
 0x103   : > { %v3424_v47 = vsel %vm1402_vm4, %v1397_v61, %v752_v17  ;;  %v3427_v53 = vsel %vm1402_vm4, %v1398_v11, %v754_v23  ;;  %v4609_v23 = vld [vmem:[#allocation36_spill] sm:$0xff] }
 0x104   : > { %931 = vrot.lane.b32.xlu1 %v4607_v34, %s2443_s9  ;;  %933 = vrot.lane.b32.xlu0 %v4608_v10, %s2443_s9  ;;  %4622 = vst [vmem:[#allocation36_spill] sm:$0xff] %v3489_v15 }
 0x106   : > { %v756_v20 = vpop.permute.xlu1 %755  ;;  %v758_v17 = vpop.permute.xlu0 %757 }
 0x107   : > { %v3440_v61 = vsel %vm1402_vm4, %v1399_v60, %v756_v20  ;;  %v3443_v11 = vsel %vm1402_vm4, %v1400_v9, %v758_v17  ;;  %v4610_v20 = vld [vmem:[#allocation40_spill] sm:$0xff]  ;;  %v4611_v60 = vld [vmem:[#allocation43_spill] sm:$0xff] }
 0x108   : > { %935 = vrot.lane.b32.xlu1 %v4609_v23, %s2443_s9  ;;  %937 = vrot.lane.b32.xlu0 %v2873_v40, %s2443_s9  ;;  %v4612_v9 = vld [vmem:[#allocation87_spill] sm:$0xff] }
 0x109   : > { %v591_v17 = vrot.slane %v4612_v9, 1 }
 0x10a   : > { %v760_v22 = vpop.permute.xlu1 %759  ;;  %v3452_v0 = vpop.permute.xlu0 %793 }
 0x10b   : > { %v3455_v29 = vsel %vm1402_vm4, %v1401_v24, %v760_v22  ;;  %v4617_v22 = vld [vmem:[#allocation44_spill] sm:$0xff]  ;;  %v4618_v24 = vld [vmem:[#allocation45_spill] sm:$0xff] }
 0x10c   : > { %939 = vrot.lane.b32.xlu1 %v4610_v20, %s2443_s9  ;;  %941 = vrot.lane.b32.xlu0 %v4611_v60, %s2443_s9  ;;  %v3477_v60 = vsel %vm427_vm1, %v591_v17, %v592_v7 }
 0x10d   : > { %4619 = vst [vmem:[#allocation34_spill] sm:$0xff] %v3477_v60 }
 0x10e   : > { %v3463_v40 = vpop.permute.xlu1 %795  ;;  %v3465_v2 = vpop.permute.xlu0 %797 }
 0x10f   : > { %4613 = vst [vmem:[#allocation31_spill] sm:$0xff] %v3463_v40  ;;  %4614 = vst [vmem:[#allocation32_spill] sm:$0xff] %v3465_v2 }
 0x110   : > { %943 = vrot.lane.b32.xlu1 %v4617_v22, %s2443_s9  ;;  %945 = vrot.lane.b32.xlu0 %v4618_v24, %s2443_s9 }
 0x112   : > { %v3480_v9 = vpop.permute.xlu1 %799  ;;  %v3482_v40 = vpop.permute.xlu0 %801 }
 0x113   : > { %4620 = vst [vmem:[#allocation35_spill] sm:$0xff] %v3482_v40 }
 0x114   : > { %947 = vrot.lane.b32.xlu1 %v4621_v19, %s2443_s9  ;;  %949 = vrot.lane.b32.xlu0 %v3477_v60, %s2443_s9  ;;  %v4623_v60 = vld [vmem:[#allocation47_spill] sm:$0xff] }
 0x116   : > { %v804_v24 = vpop.permute.xlu1 %803  ;;  %v806_v2 = vpop.permute.xlu0 %805 }
 0x117   : > { %v3493_v17 = vsel %vm1435_vm5, %v3264_v16, %v804_v24  ;;  %v3497_v63 = vsel %vm1435_vm5, %v3267_v43, %v806_v2  ;;  %v4624_v43 = vld [vmem:[#allocation48_spill] sm:$0xff]  ;;  %v4625_v2 = vld [vmem:[#allocation49_spill] sm:$0xff] }
 0x118   : > { %951 = vrot.lane.b32.xlu1 %v3489_v15, %s2443_s9  ;;  %985 = vrot.lane.b32.xlu0 %v4623_v60, %s2444_s10 }
 0x11a   : > { %v808_v32 = vpop.permute.xlu1 %807  ;;  %v810_v7 = vpop.permute.xlu0 %809 }
 0x11b   : > { %v3505_v40 = vsel %vm1435_vm5, %v3280_v3, %v808_v32  ;;  %v3509_v16 = vsel %vm1435_vm5, %v3283_v13, %v810_v7  ;;  %v4626_v32 = vld [vmem:[#allocation50_spill] sm:$0xff]  ;;  %v4627_v13 = vld [vmem:[#allocation63_spill] sm:$0xff] }
 0x11c   : > { %987 = vrot.lane.b32.xlu1 %v4624_v43, %s2444_s10  ;;  %989 = vrot.lane.b32.xlu0 %v4625_v2, %s2444_s10 }
 0x11e   : > { %v812_v24 = vpop.permute.xlu1 %811  ;;  %v814_v15 = vpop.permute.xlu0 %813 }
 0x11f   : > { %v3517_v60 = vsel %vm1435_vm5, %v3296_v62, %v812_v24  ;;  %v3521_v3 = vsel %vm1435_vm5, %v3299_v5, %v814_v15  ;;  %v4628_v24 = vld [vmem:[#allocation64_spill] sm:$0xff]  ;;  %v4629_v5 = vld [vmem:[#allocation10_spill] sm:$0xff]  ;;  %v1637_v15 = vld [vmem:[%s4358_s1 + $0x20] sm:$0xf] }
 0x120   : > { %991 = vrot.lane.b32.xlu1 %v4626_v32, %s2444_s10  ;;  %1017 = vrot.lane.b32.xlu0 %v4627_v13, %s2444_s10 }
 0x121   : > { %2236 = vmatprep.subr.msk.mxu0 %vm1742_vm6, %v1637_v15  ;;  %2294 = vmatprep.subr.msk.mxu1 %vm1742_vm6, %v1637_v15 }
 0x122   : > { %v816_v7 = vpop.permute.xlu1 %815  ;;  %v818_v43 = vpop.permute.xlu0 %817  ;;  %2237 = vmatpush3.msk.msra.mxu0 %vm1742_vm6, %v1637_v15  ;;  %2299 = vmatpush3.msk.msra.mxu1 %vm1742_vm6, %v1637_v15 }
 0x123   : > { %v3529_v19 = vsel %vm1435_vm5, %v3312_v48, %v816_v7  ;;  %v3533_v62 = vsel %vm1435_vm5, %v3315_v37, %v818_v43 }
 0x124   : > { %1019 = vrot.lane.b32.xlu1 %v4628_v24, %s2444_s10  ;;  %1081 = vrot.lane.b32.xlu0 %v4629_v5, %s2445_s11  ;;  %v1636_v24 = vld [vmem:[%s4358_s1 + $0x18] sm:$0xff] }
 0x125   : > { %2238 = vmatprep.subr.mxu0 %v1636_v24  ;;  %2295 = vmatprep.subr.mxu1 %v1636_v24 }
 0x126   : > { %v820_v48 = vpop.permute.xlu1 %819  ;;  %v822_v7 = vpop.permute.xlu0 %821  ;;  %2239 = vmatpush3.msra.mxu0 %v1636_v24  ;;  %2300 = vmatpush3.msra.mxu1 %v1636_v24 }
 0x127   : > { %v3544_v37 = vsel %vm1435_vm5, %v3328_v58, %v820_v48  ;;  %v3548_v43 = vsel %vm1435_vm5, %v3331_v36, %v822_v7  ;;  %v1635_v58 = vld [vmem:[%s4358_s1 + $0x10] sm:$0xff] }
 0x128   : > { %1113 = vrot.lane.b32.xlu1 %v2755_v49, %s2445_s11  ;;  %1083 = vrot.lane.b32.xlu0 %v2568_v30, %s2445_s11  ;;  %v1634_v30 = vld [vmem:[%s4358_s1 + $0x8] sm:$0xff] }
 0x129   : > { %2240 = vmatprep.subr.mxu0 %v1635_v58  ;;  %2296 = vmatprep.subr.mxu1 %v1635_v58 }
 0x12a   : > { %v824_v15 = vpop.permute.xlu1 %823  ;;  %v3560_v48 = vpop.permute.xlu0 %825  ;;  %2241 = vmatpush3.msra.mxu0 %v1635_v58  ;;  %2301 = vmatpush3.msra.mxu1 %v1635_v58 }
 0x12b   : > { %v3564_v36 = vsel %vm1435_vm5, %v3343_v39, %v824_v15  ;;  %2242 = vmatprep.subr.mxu0 %v1634_v30  ;;  %2297 = vmatprep.subr.mxu1 %v1634_v30  ;;  %v1633_v39 = vld [vmem:[%s4358_s1] sm:$0xff] }
 0x12c   : > { %1115 = vrot.lane.b32.xlu1 %v2761_v54, %s2445_s11  ;;  %1177 = vrot.lane.b32.xlu0 %v2602_v45, %s2446_s29 }
 0x12d   : > { %2243 = vmatpush3.msra.mxu0 %v1634_v30  ;;  %2302 = vmatpush3.msra.mxu1 %v1634_v30 }
 0x12e   : > { %v3573_v49 = vpop.permute.xlu1 %827  ;;  %v3575_v24 = vpop.permute.xlu0 %829  ;;  %2244 = vmatprep.subr.mxu0 %v1633_v39  ;;  %2298 = vmatprep.subr.mxu1 %v1633_v39 }
 0x12f   : > { %2245 = vmatpush3.msra.mxu0 %v1633_v39  ;;  %2303 = vmatpush3.msra.mxu1 %v1633_v39 }
 0x130   : > { %1209 = vrot.lane.b32.xlu1 %v4604_v31, %s2446_s29  ;;  %1179 = vrot.lane.b32.xlu0 %v2605_v46, %s2446_s29 }
 0x132   : > { %v3584_v45 = vpop.permute.xlu1 %831  ;;  %v834_v54 = vpop.permute.xlu0 %833 }
 0x133   : > { %v3588_v7 = vsel %vm1435_vm5, %v3363_v18, %v834_v54  ;;  %v4630_v18 = vld [vmem:[#allocation65_spill] sm:$0xff] }
 0x134   : > { %1211 = vrot.lane.b32.xlu1 %v4605_v28, %s2446_s29  ;;  %1273 = vrot.lane.b32.xlu0 %v4625_v2, %s2447_s6 }
 0x136   : > { %v836_v31 = vpop.permute.xlu1 %835  ;;  %v838_v46 = vpop.permute.xlu0 %837 }
 0x137   : > { %v3596_v58 = vsel %vm1435_vm5, %v3376_v33, %v836_v31  ;;  %v3600_v15 = vsel %vm1435_vm5, %v3379_v27, %v838_v46  ;;  %v4631_v27 = vld [vmem:[#allocation66_spill] sm:$0xff] }
 0x138   : > { %1305 = vrot.lane.b32.xlu1 %v4630_v18, %s2447_s6  ;;  %1021 = vrot.lane.b32.xlu0 %v4630_v18, %s2444_s10 }
 0x13a   : > { %v840_v28 = vpop.permute.xlu1 %839  ;;  %v842_v30 = vpop.permute.xlu0 %841 }
 0x13b   : > { %v3608_v2 = vsel %vm1435_vm5, %v3392_v44, %v840_v28  ;;  %v3612_v33 = vsel %vm1435_vm5, %v3395_v55, %v842_v30  ;;  %v4633_v28 = vld [vmem:[#allocation67_spill] sm:$0xff] }
 0x13c   : > { %1275 = vrot.lane.b32.xlu1 %v4626_v32, %s2447_s6  ;;  %1307 = vrot.lane.b32.xlu0 %v4631_v27, %s2447_s6 }
 0x13e   : > { %v844_v39 = vpop.permute.xlu1 %843  ;;  %v846_v54 = vpop.permute.xlu0 %845 }
 0x13f   : > { %v3620_v31 = vsel %vm1435_vm5, %v3408_v25, %v844_v39  ;;  %v3624_v44 = vsel %vm1435_vm5, %v3411_v42, %v846_v54 }
 0x140   : > { %1023 = vrot.lane.b32.xlu1 %v4631_v27, %s2444_s10  ;;  %1085 = vrot.lane.b32.xlu0 %v2595_v41, %s2445_s11  ;;  %v4634_v27 = vld [vmem:[#allocation52_spill] sm:$0xff] }
 0x142   : > { %v848_v55 = vpop.permute.xlu1 %847  ;;  %v850_v32 = vpop.permute.xlu0 %849 }
 0x143   : > { %v3632_v46 = vsel %vm1435_vm5, %v3424_v47, %v848_v55  ;;  %v3636_v25 = vsel %vm1435_vm5, %v3427_v53, %v850_v32  ;;  %v4635_v32 = vld [vmem:[#allocation68_spill] sm:$0xff] }
 0x144   : > { %1117 = vrot.lane.b32.xlu1 %v2784_v26, %s2445_s11  ;;  %1087 = vrot.lane.b32.xlu0 %v2579_v35, %s2445_s11 }
 0x146   : > { %v852_v42 = vpop.permute.xlu1 %851  ;;  %v854_v18 = vpop.permute.xlu0 %853 }
 0x147   : > { %v3644_v41 = vsel %vm1435_vm5, %v3440_v61, %v852_v42  ;;  %v3648_v47 = vsel %vm1435_vm5, %v3443_v11, %v854_v18 }
 0x148   : > { %1119 = vrot.lane.b32.xlu1 %v2787_v38, %s2445_s11  ;;  %1181 = vrot.lane.b32.xlu0 %v2622_v56, %s2446_s29  ;;  %v4632_v56 = vld [vmem:[#allocation51_spill] sm:$0xff] }
 0x14a   : > { %v856_v26 = vpop.permute.xlu1 %855  ;;  %v3654_v53 = vpop.permute.xlu0 %889 }
 0x14b   : > { %v3658_v35 = vsel %vm1435_vm5, %v3455_v29, %v856_v26 }
 0x14c   : > { %1213 = vrot.lane.b32.xlu1 %v4606_v1, %s2446_s29  ;;  %1183 = vrot.lane.b32.xlu0 %v2629_v57, %s2446_s29 }
 0x14e   : > { %v3664_v61 = vpop.permute.xlu1 %891  ;;  %v3666_v11 = vpop.permute.xlu0 %893 }
 0x150   : > { %1215 = vrot.lane.b32.xlu1 %v4607_v34, %s2446_s29  ;;  %1277 = vrot.lane.b32.xlu0 %v4632_v56, %s2447_s6 }
 0x152   : > { %v3672_v38 = vpop.permute.xlu1 %895  ;;  %v3674_v29 = vpop.permute.xlu0 %897 }
 0x154   : > { %1309 = vrot.lane.b32.xlu1 %v4633_v28, %s2447_s6  ;;  %993 = vrot.lane.b32.xlu0 %v4632_v56, %s2444_s10 }
 0x156   : > { %v900_v57 = vpop.permute.xlu1 %899  ;;  %v902_v1 = vpop.permute.xlu0 %901 }
 0x157   : > { %v3682_v30 = vsel %vm1468_vm7, %v3493_v17, %v900_v57  ;;  %v3686_v34 = vsel %vm1468_vm7, %v3497_v63, %v902_v1 }
 0x158   : > { %1025 = vrot.lane.b32.xlu1 %v4633_v28, %s2444_s10  ;;  %1279 = vrot.lane.b32.xlu0 %v4634_v27, %s2447_s6 }
 0x15a   : > { %v904_v39 = vpop.permute.xlu1 %903  ;;  %v906_v54 = vpop.permute.xlu0 %905 }
 0x15b   : > { %v3694_v55 = vsel %vm1468_vm7, %v3505_v40, %v904_v39  ;;  %v3698_v17 = vsel %vm1468_vm7, %v3509_v16, %v906_v54 }
 0x15c   : > { %1311 = vrot.lane.b32.xlu1 %v4635_v32, %s2447_s6  ;;  %995 = vrot.lane.b32.xlu0 %v4634_v27, %s2444_s10 }
 0x15e   : > { %v908_v63 = vpop.permute.xlu1 %907  ;;  %v910_v42 = vpop.permute.xlu0 %909 }
 0x15f   : > { %v3706_v18 = vsel %vm1468_vm7, %v3517_v60, %v908_v63  ;;  %v3710_v40 = vsel %vm1468_vm7, %v3521_v3, %v910_v42  ;;  %v4641_v63 = vld [vmem:[#allocation70_spill] sm:$0xff] }
 0x160   : > { %1027 = vrot.lane.b32.xlu1 %v4635_v32, %s2444_s10  ;;  %1089 = vrot.lane.b32.xlu0 %v2615_v52, %s2445_s11 }
 0x162   : > { %v912_v16 = vpop.permute.xlu1 %911  ;;  %v914_v26 = vpop.permute.xlu0 %913 }
 0x163   : > { %v3718_v56 = vsel %vm1468_vm7, %v3529_v19, %v912_v16  ;;  %v3722_v60 = vsel %vm1468_vm7, %v3533_v62, %v914_v26 }
 0x164   : > { %1121 = vrot.lane.b32.xlu1 %v2813_v8, %s2445_s11  ;;  %1091 = vrot.lane.b32.xlu0 %v2612_v51, %s2445_s11 }
 0x166   : > { %v916_v3 = vpop.permute.xlu1 %915  ;;  %v918_v28 = vpop.permute.xlu0 %917 }
 0x167   : > { %v3730_v52 = vsel %vm1468_vm7, %v3544_v37, %v916_v3  ;;  %v3734_v19 = vsel %vm1468_vm7, %v3548_v43, %v918_v28 }
 0x168   : > { %4636 = vst [vmem:[#allocation40_spill] sm:$0xff] %v3734_v19  ;;  %1123 = vrot.lane.b32.xlu1 %v2810_v21, %s2445_s11  ;;  %1185 = vrot.lane.b32.xlu0 %v2655_v14, %s2446_s29  ;;  %v4638_v14 = vld [vmem:[#allocation53_spill] sm:$0xff]  ;;  %v4661_v19 = vld [vmem:[#allocation82_spill] sm:$0xff] }
 0x16a   : > { %v920_v8 = vpop.permute.xlu1 %919  ;;  %v3740_v62 = vpop.permute.xlu0 %921 }
 0x16b   : > { %v3744_v51 = vsel %vm1468_vm7, %v3564_v36, %v920_v8 }
 0x16c   : > { %4637 = vst [vmem:[#allocation44_spill] sm:$0xff] %v3744_v51  ;;  %1217 = vrot.lane.b32.xlu1 %v4608_v10, %s2446_s29  ;;  %1187 = vrot.lane.b32.xlu0 %v4589_v4, %s2446_s29  ;;  %v4639_v10 = vld [vmem:[#allocation69_spill] sm:$0xff] }
 0x16d   : > { %v4656_v51 = vld [vmem:[#allocation81_spill] sm:$0xff] }
 0x16e   : > { %v3750_v37 = vpop.permute.xlu1 %923  ;;  %v3752_v43 = vpop.permute.xlu0 %925 }
 0x170   : > { %1219 = vrot.lane.b32.xlu1 %v4609_v23, %s2446_s29  ;;  %1281 = vrot.lane.b32.xlu0 %v4638_v14, %s2447_s6 }
 0x172   : > { %v3758_v21 = vpop.permute.xlu1 %927  ;;  %v930_v36 = vpop.permute.xlu0 %929 }
 0x173   : > { %v3762_v57 = vsel %vm1468_vm7, %v3588_v7, %v930_v36  ;;  %v4640_v7 = vld [vmem:[#allocation54_spill] sm:$0xff] }
 0x174   : > { %1313 = vrot.lane.b32.xlu1 %v4639_v10, %s2447_s6  ;;  %997 = vrot.lane.b32.xlu0 %v4638_v14, %s2444_s10  ;;  %v4646_v14 = vld [vmem:[#allocation39_spill] sm:$0xff] }
 0x176   : > { %v932_v4 = vpop.permute.xlu1 %931  ;;  %v934_v1 = vpop.permute.xlu0 %933 }
 0x177   : > { %v3770_v23 = vsel %vm1468_vm7, %v3596_v58, %v932_v4  ;;  %v3774_v27 = vsel %vm1468_vm7, %v3600_v15, %v934_v1  ;;  %v4649_v4 = vld [vmem:[#allocation71_spill] sm:$0xff] }
 0x178   : > { %1029 = vrot.lane.b32.xlu1 %v4639_v10, %s2444_s10  ;;  %1283 = vrot.lane.b32.xlu0 %v4640_v7, %s2447_s6 }
 0x17a   : > { %v936_v39 = vpop.permute.xlu1 %935  ;;  %v938_v54 = vpop.permute.xlu0 %937 }
 0x17b   : > { %v3782_v32 = vsel %vm1468_vm7, %v3608_v2, %v936_v39  ;;  %v3786_v58 = vsel %vm1468_vm7, %v3612_v33, %v938_v54  ;;  %v4650_v39 = vld [vmem:[#allocation56_spill] sm:$0xff] }
 0x17c   : > { %1315 = vrot.lane.b32.xlu1 %v4641_v63, %s2447_s6  ;;  %999 = vrot.lane.b32.xlu0 %v4640_v7, %s2444_s10 }
 0x17e   : > { %v940_v15 = vpop.permute.xlu1 %939  ;;  %v942_v42 = vpop.permute.xlu0 %941 }
 0x17f   : > { %v3794_v16 = vsel %vm1468_vm7, %v3620_v31, %v940_v15  ;;  %v3798_v2 = vsel %vm1468_vm7, %v3624_v44, %v942_v42  ;;  %v4652_v42 = vld [vmem:[#allocation72_spill] sm:$0xff] }
 0x180   : > { %1031 = vrot.lane.b32.xlu1 %v4641_v63, %s2444_s10  ;;  %1093 = vrot.lane.b32.xlu0 %v2632_v59, %s2445_s11  ;;  %v4651_v63 = vld [vmem:[#allocation74_spill] sm:$0xff] }
 0x181   : > { %v2355_v15 = vunpack.i.l.bf16 %v4651_v63 }
 0x182   : > { %v944_v33 = vpop.permute.xlu1 %943  ;;  %v946_v26 = vpop.permute.xlu0 %945 }
 0x183   : > { %v3806_v3 = vsel %vm1468_vm7, %v3632_v46, %v944_v33  ;;  %v3810_v31 = vsel %vm1468_vm7, %v3636_v25, %v946_v26  ;;  %v4644_v25 = vld [vmem:[#allocation14_spill] sm:$0xff]  ;;  %v4653_v33 = vld [vmem:[#allocation85_spill] sm:$0xff] }
 0x184   : > { %1125 = vrot.lane.b32.xlu1 %v2834_v50, %s2445_s11  ;;  %1095 = vrot.lane.b32.xlu0 %v2640_v6, %s2445_s11  ;;  %v2360_v26 = vunpack.i.l.bf16 %v4653_v33 }
 0x186   : > { %v948_v44 = vpop.permute.xlu1 %947  ;;  %v950_v28 = vpop.permute.xlu0 %949 }
 0x187   : > { %v3818_v59 = vsel %vm1468_vm7, %v3644_v41, %v948_v44  ;;  %v3822_v46 = vsel %vm1468_vm7, %v3648_v47, %v950_v28  ;;  %v4647_v41 = vld [vmem:[#allocation17_spill] sm:$0xff] }
 0x188   : > { %4642 = vst [vmem:[#allocation47_spill] sm:$0xff] %v3818_v59  ;;  %4643 = vst [vmem:[#allocation48_spill] sm:$0xff] %v3822_v46  ;;  %1127 = vrot.lane.b32.xlu1 %v2838_v12, %s2445_s11  ;;  %1189 = vrot.lane.b32.xlu0 %v4644_v25, %s2446_s29  ;;  %v4648_v12 = vld [vmem:[#allocation55_spill] sm:$0xff]  ;;  %v4654_v25 = vld [vmem:[#allocation6_spill] sm:$0xff] }
 0x18a   : > { %v952_v50 = vpop.permute.xlu1 %951  ;;  %v986_v8 = vpop.permute.xlu0 %985 }
 0x18b   : > { %v3830_v6 = vsel %vm1468_vm7, %v3658_v35, %v952_v50  ;;  %v1370_v50 = vsel %vm1369_vm3, %v4654_v25, %v2355_v15  ;;  %v2356_v15 = vunpack.i.h.bf16 %v4651_v63 }
 0x18c   : > { %4645 = vst [vmem:[#allocation49_spill] sm:$0xff] %v3830_v6  ;;  %1221 = vrot.lane.b32.xlu1 %v4646_v14, %s2446_s29  ;;  %1191 = vrot.lane.b32.xlu0 %v4647_v41, %s2446_s29  ;;  %v4655_v14 = vld [vmem:[#allocation11_spill] sm:$0xff]  ;;  %v1403_v41 = vsel %vm1402_vm4, %v1370_v50, %v2360_v26  ;;  %v4658_v26 = vld [vmem:[#allocation38_spill] sm:$0xff]  ;;  %v2361_v50 = vunpack.i.h.bf16 %v4653_v33  ;;  %v4662_v33 = vld [vmem:[#allocation20_spill] sm:$0xff] }
 0x18d   : > { %v1387_v59 = vsel %vm1369_vm3, %v4662_v33, %v4661_v19  ;;  %v4667_v19 = vld [vmem:[#allocation31_spill] sm:$0xff] }
 0x18e   : > { %v3836_v47 = vpop.permute.xlu1 %987  ;;  %v3838_v36 = vpop.permute.xlu0 %989 }
 0x190   : > { %1223 = vrot.lane.b32.xlu1 %v4610_v20, %s2446_s29  ;;  %1285 = vrot.lane.b32.xlu0 %v4648_v12, %s2447_s6 }
 0x192   : > { %v3844_v10 = vpop.permute.xlu1 %991  ;;  %v1018_v35 = vpop.permute.xlu0 %1017 }
 0x194   : > { %1317 = vrot.lane.b32.xlu1 %v4649_v4, %s2447_s6  ;;  %1001 = vrot.lane.b32.xlu0 %v4648_v12, %s2444_s10  ;;  %v1436_v12 = vsel %vm1435_vm5, %v1403_v41, %v3452_v0  ;;  %v4659_v0 = vld [vmem:[#allocation13_spill] sm:$0xff]  ;;  %v4660_v41 = vld [vmem:[#allocation12_spill] sm:$0xff] }
 0x195   : > { %v1469_v6 = vsel %vm1468_vm7, %v1436_v12, %v3654_v53 }
 0x196   : > { %v1020_v1 = vpop.permute.xlu1 %1019  ;;  %v1082_v7 = vpop.permute.xlu0 %1081 }
 0x198   : > { %1033 = vrot.lane.b32.xlu1 %v4649_v4, %s2444_s10  ;;  %1287 = vrot.lane.b32.xlu0 %v4650_v39, %s2447_s6 }
 0x19a   : > { %v1114_v20 = vpop.permute.xlu1 %1113  ;;  %v1084_v54 = vpop.permute.xlu0 %1083 }
 0x19c   : > { %1319 = vrot.lane.b32.xlu1 %v4652_v42, %s2447_s6  ;;  %1003 = vrot.lane.b32.xlu0 %v4650_v39, %s2444_s10 }
 0x19e   : > { %v1116_v44 = vpop.permute.xlu1 %1115  ;;  %v1178_v28 = vpop.permute.xlu0 %1177 }
 0x1a0   : > { %1035 = vrot.lane.b32.xlu1 %v4652_v42, %s2444_s10  ;;  %1097 = vrot.lane.b32.xlu0 %v4655_v14, %s2445_s11  ;;  %v4657_v42 = vld [vmem:[#allocation21_spill] sm:$0xff]  ;;  %v1502_v14 = vsel %vm1501_vm8, %v1469_v6, %v986_v8 }
 0x1a1   : > { %v1386_v46 = vsel %vm1369_vm3, %v4657_v42, %v4656_v51  ;;  %v1535_v63 = vsel %vm1534_vm9, %v1502_v14, %v1082_v7 }
 0x1a2   : > { %v1210_v4 = vpop.permute.xlu1 %1209  ;;  %v1180_v39 = vpop.permute.xlu0 %1179  ;;  %v1419_v53 = vsel %vm1402_vm4, %v1386_v46, %v4660_v41  ;;  %v1568_v51 = vsel %vm1567_vm10, %v1535_v63, %v1178_v28  ;;  %v4663_v46 = vld [vmem:[#allocation5_spill] sm:$0xff]  ;;  %v4665_v28 = vld [vmem:[#allocation18_spill] sm:$0xff]  ;;  %v4666_v41 = vld [vmem:[#allocation91_spill] sm:$0xff] }
 0x1a3   : > { %v1452_v12 = vsel %vm1435_vm5, %v1419_v53, %v3560_v48  ;;  %v1371_v7 = vsel %vm1369_vm3, %v4663_v46, %v2356_v15  ;;  %v4664_v48 = vld [vmem:[#allocation37_spill] sm:$0xff] }
 0x1a4   : > { %1129 = vrot.lane.b32.xlu1 %v4658_v26, %s2445_s11  ;;  %1099 = vrot.lane.b32.xlu0 %v4659_v0, %s2445_s11  ;;  %v1485_v26 = vsel %vm1468_vm7, %v1452_v12, %v3740_v62  ;;  %v1420_v62 = vsel %vm1402_vm4, %v1387_v59, %v4666_v41  ;;  %v1404_v53 = vsel %vm1402_vm4, %v1371_v7, %v2361_v50  ;;  %v4668_v7 = vld [vmem:[#allocation43_spill] sm:$0xff]  ;;  %v4670_v41 = vld [vmem:[#allocation57_spill] sm:$0xff] }
 0x1a5   : > { %v1518_v14 = vsel %vm1501_vm8, %v1485_v26, %v1018_v35  ;;  %v1437_v15 = vsel %vm1435_vm5, %v1404_v53, %v4667_v19  ;;  %v1453_v35 = vsel %vm1435_vm5, %v1420_v62, %v3573_v49  ;;  %v4669_v49 = vld [vmem:[#allocation19_spill] sm:$0xff]  ;;  %v4673_v19 = vld [vmem:[#allocation78_spill] sm:$0xff] }
 0x1a6   : > { %v1212_v8 = vpop.permute.xlu1 %1211  ;;  %v1274_v6 = vpop.permute.xlu0 %1273  ;;  %v1551_v63 = vsel %vm1534_vm9, %v1518_v14, %v1114_v20  ;;  %v1470_v26 = vsel %vm1468_vm7, %v1437_v15, %v3664_v61  ;;  %v1486_v59 = vsel %vm1468_vm7, %v1453_v35, %v3750_v37  ;;  %v4674_v15 = vld [vmem:[#allocation9_spill] sm:$0xff] }
 0x1a7   : > { %v1601_v0 = vsel %vm1600_vm11, %v1568_v51, %v1274_v6  ;;  %v1584_v12 = vsel %vm1567_vm10, %v1551_v63, %v1210_v4  ;;  %v1503_v50 = vsel %vm1501_vm8, %v1470_v26, %v3836_v47  ;;  %v1372_v35 = vsel %vm1369_vm3, %v4674_v15, %v4673_v19  ;;  %v4682_v19 = vld [vmem:[#allocation77_spill] sm:$0xff]  ;;  %v4683_v15 = vld [vmem:[#allocation8_spill] sm:$0xff] }
 0x1a8   : > { %1131 = vrot.lane.b32.xlu1 %v4664_v48, %s2445_s11  ;;  %1193 = vrot.lane.b32.xlu0 %v4665_v28, %s2446_s29  ;;  %v1536_v4 = vsel %vm1534_vm9, %v1503_v50, %v1084_v54 }
 0x1a9   : > { %2246 = vmatprep.mubr.msk.f32.mxu0 %vm1645_vm12, %v1601_v0  ;;  %v1519_v0 = vsel %vm1501_vm8, %v1486_v59, %v1020_v1  ;;  %v1569_v37 = vsel %vm1567_vm10, %v1536_v4, %v1180_v39  ;;  %v4671_v39 = vld [vmem:[#allocation73_spill] sm:$0xff]  ;;  %v4677_v59 = vld [vmem:[#allocation32_spill] sm:$0xff] }
 0x1aa   : > { %v1306_v51 = vpop.permute.xlu1 %1305  ;;  %v1022_v6 = vpop.permute.xlu0 %1021  ;;  %v1552_v61 = vsel %vm1534_vm9, %v1519_v0, %v1116_v44  ;;  %v4679_v4 = vld [vmem:[#allocation24_spill] sm:$0xff] }
 0x1ab   : > { %v1617_v20 = vsel %vm1600_vm11, %v1584_v12, %v1306_v51  ;;  %v1585_v14 = vsel %vm1567_vm10, %v1552_v61, %v1212_v8  ;;  %v4675_v12 = vld [vmem:[#allocation75_spill] sm:$0xff]  ;;  %v4676_v51 = vld [vmem:[#allocation86_spill] sm:$0xff] }
 0x1ac   : > { %1225 = vrot.lane.b32.xlu1 %v4668_v7, %s2446_s29  ;;  %1195 = vrot.lane.b32.xlu0 %v4669_v49, %s2446_s29  ;;  %v1405_v26 = vsel %vm1402_vm4, %v1372_v35, %v4676_v51  ;;  %v4678_v49 = vld [vmem:[#allocation83_spill] sm:$0xff]  ;;  %v1373_v35 = vsel %vm1369_vm3, %v4683_v15, %v4682_v19  ;;  %v4692_v19 = vld [vmem:[#allocation45_spill] sm:$0xff] }
 0x1ad   : > { %2270 = vmatprep.mubr.msk.f32.mxu1 %vm1645_vm12, %v1617_v20  ;;  %v1438_v20 = vsel %vm1435_vm5, %v1405_v26, %v4677_v59  ;;  %v1388_v61 = vsel %vm1369_vm3, %v4679_v4, %v4678_v49 }
 0x1ae   : > { %v1276_v48 = vpop.permute.xlu1 %1275  ;;  %v1308_v47 = vpop.permute.xlu0 %1307  ;;  %v1471_v7 = vsel %vm1468_vm7, %v1438_v20, %v3666_v11 }
 0x1af   : > { %v1602_v1 = vsel %vm1600_vm11, %v1569_v37, %v1276_v48  ;;  %v1618_v28 = vsel %vm1600_vm11, %v1585_v14, %v1308_v47  ;;  %v1504_v37 = vsel %vm1501_vm8, %v1471_v7, %v3838_v36  ;;  %v4680_v14 = vld [vmem:[#allocation16_spill] sm:$0xff] }
 0x1b0   : > { %1227 = vrot.lane.b32.xlu1 %v4617_v22, %s2446_s29  ;;  %1289 = vrot.lane.b32.xlu0 %v4670_v41, %s2447_s6  ;;  %v4672_v22 = vld [vmem:[#allocation58_spill] sm:$0xff]  ;;  %v4681_v48 = vld [vmem:[#allocation92_spill] sm:$0xff] }
 0x1b1   : > { %2247 = vmatmul.mubr.msk.f32.vlgmr.msra.gmra.mxu0 %vm1645_vm12, %v1602_v1  ;;  %2271 = vmatmul.mubr.msk.f32.vlgmr.msra.gmra.mxu1 %vm1645_vm12, %v1618_v28  ;;  %v1421_v47 = vsel %vm1402_vm4, %v1388_v61, %v4681_v48  ;;  %v4687_v61 = vld [vmem:[#allocation84_spill] sm:$0xff]  ;;  %v4689_v48 = vld [vmem:[#allocation42_spill] sm:$0xff] }
 0x1b2   : > { %v1024_v54 = vpop.permute.xlu1 %1023  ;;  %v1086_v44 = vpop.permute.xlu0 %1085  ;;  %v1454_v11 = vsel %vm1435_vm5, %v1421_v47, %v3575_v24  ;;  %v4685_v24 = vld [vmem:[#allocation15_spill] sm:$0xff] }
 0x1b3   : > { %v1537_v1 = vsel %vm1534_vm9, %v1504_v37, %v1086_v44  ;;  %v1487_v36 = vsel %vm1468_vm7, %v1454_v11, %v3752_v43  ;;  %v4684_v44 = vld [vmem:[#allocation41_spill] sm:$0xff]  ;;  %v4688_v37 = vld [vmem:[#allocation23_spill] sm:$0xff] }
 0x1b4   : > { %1321 = vrot.lane.b32.xlu1 %v4671_v39, %s2447_s6  ;;  %1005 = vrot.lane.b32.xlu0 %v4670_v41, %s2444_s10 }
 0x1b6   : > { %v1118_v8 = vpop.permute.xlu1 %1117  ;;  %v1088_v62 = vpop.permute.xlu0 %1087 }
 0x1b8   : > { %1037 = vrot.lane.b32.xlu1 %v4671_v39, %s2444_s10  ;;  %1291 = vrot.lane.b32.xlu0 %v4672_v22, %s2447_s6 }
 0x1ba   : > { %v1120_v53 = vpop.permute.xlu1 %1119  ;;  %v1182_v63 = vpop.permute.xlu0 %1181 }
 0x1bb   : > { %v1570_v28 = vsel %vm1567_vm10, %v1537_v1, %v1182_v63  ;;  %v4686_v63 = vld [vmem:[#allocation88_spill] sm:$0xff] }
 0x1bc   : > { %1323 = vrot.lane.b32.xlu1 %v4675_v12, %s2447_s6  ;;  %1007 = vrot.lane.b32.xlu0 %v4672_v22, %s2444_s10  ;;  %v1406_v51 = vsel %vm1402_vm4, %v1373_v35, %v4686_v63 }
 0x1bd   : > { %v1439_v43 = vsel %vm1435_vm5, %v1406_v51, %v3480_v9  ;;  %v4690_v9 = vld [vmem:[#allocation22_spill] sm:$0xff]  ;;  %v4697_v51 = vld [vmem:[#allocation60_spill] sm:$0xff] }
 0x1be   : > { %v1214_v50 = vpop.permute.xlu1 %1213  ;;  %v1184_v0 = vpop.permute.xlu0 %1183  ;;  %v1472_v7 = vsel %vm1468_vm7, %v1439_v43, %v3672_v38 }
 0x1c0   : > { %1039 = vrot.lane.b32.xlu1 %v4675_v12, %s2444_s10  ;;  %1101 = vrot.lane.b32.xlu0 %v4680_v14, %s2445_s11  ;;  %v1520_v12 = vsel %vm1501_vm8, %v1487_v36, %v1022_v6  ;;  %v1389_v14 = vsel %vm1369_vm3, %v4688_v37, %v4687_v61 }
 0x1c1   : > { %v1553_v26 = vsel %vm1534_vm9, %v1520_v12, %v1118_v8  ;;  %v1505_v8 = vsel %vm1501_vm8, %v1472_v7, %v3844_v10  ;;  %v4694_v12 = vld [vmem:[#allocation46_spill] sm:$0xff]  ;;  %v4699_v7 = vld [vmem:[#allocation79_spill] sm:$0xff] }
 0x1c2   : > { %v1216_v41 = vpop.permute.xlu1 %1215  ;;  %v1278_v39 = vpop.permute.xlu0 %1277  ;;  %v1586_v59 = vsel %vm1567_vm10, %v1553_v26, %v1214_v50  ;;  %v4691_v50 = vld [vmem:[#allocation93_spill] sm:$0xff]  ;;  %v1538_v38 = vsel %vm1534_vm9, %v1505_v8, %v1088_v62 }
 0x1c3   : > { %v1603_v22 = vsel %vm1600_vm11, %v1570_v28, %v1278_v39  ;;  %v1422_v47 = vsel %vm1402_vm4, %v1389_v14, %v4691_v50  ;;  %v1571_v11 = vsel %vm1567_vm10, %v1538_v38, %v1184_v0  ;;  %v4693_v62 = vld [vmem:[#allocation25_spill] sm:$0xff]  ;;  %v4701_v14 = vld [vmem:[#allocation35_spill] sm:$0xff] }
 0x1c4   : > { %1133 = vrot.lane.b32.xlu1 %v4684_v44, %s2445_s11  ;;  %1103 = vrot.lane.b32.xlu0 %v4685_v24, %s2445_s11  ;;  %v1455_v1 = vsel %vm1435_vm5, %v1422_v47, %v3584_v45 }
 0x1c5   : > { %2249 = vmatprep.mubr.msk.f32.mxu0 %vm1645_vm12, %v1603_v22  ;;  %v1488_v39 = vsel %vm1468_vm7, %v1455_v1, %v3758_v21 }
 0x1c6   : > { %v1310_v20 = vpop.permute.xlu1 %1309  ;;  %v994_v6 = vpop.permute.xlu0 %993  ;;  %v1521_v22 = vsel %vm1501_vm8, %v1488_v39, %v1024_v54  ;;  %v4695_v54 = vld [vmem:[#allocation59_spill] sm:$0xff] }
 0x1c7   : > { %v1619_v49 = vsel %vm1600_vm11, %v1586_v59, %v1310_v20  ;;  %v1554_v15 = vsel %vm1534_vm9, %v1521_v22, %v1120_v53  ;;  %v4696_v53 = vld [vmem:[#allocation76_spill] sm:$0xff] }
 0x1c8   : > { %1135 = vrot.lane.b32.xlu1 %v4689_v48, %s2445_s11  ;;  %1197 = vrot.lane.b32.xlu0 %v4690_v9, %s2446_s29  ;;  %v1587_v45 = vsel %vm1567_vm10, %v1554_v15, %v1216_v41  ;;  %v4698_v59 = vld [vmem:[#allocation80_spill] sm:$0xff] }
 0x1c9   : > { %2273 = vmatprep.mubr.msk.f32.mxu1 %vm1645_vm12, %v1619_v49  ;;  %v1374_v20 = vsel %vm1369_vm3, %v4629_v5, %v4698_v59  ;;  %v4700_v49 = vld [vmem:[#allocation89_spill] sm:$0xff] }
 0x1ca   : > { %v1026_v28 = vpop.permute.xlu1 %1025  ;;  %v1280_v10 = vpop.permute.xlu0 %1279  ;;  %v1407_v61 = vsel %vm1402_vm4, %v1374_v20, %v4700_v49 }
 0x1cb   : > { %v1604_v36 = vsel %vm1600_vm11, %v1571_v11, %v1280_v10  ;;  %v1440_v8 = vsel %vm1435_vm5, %v1407_v61, %v4701_v14  ;;  %v1522_v39 = vsel %vm1501_vm8, %v3762_v57, %v1026_v28  ;;  %v4703_v57 = vld [vmem:[#allocation90_spill] sm:$0xff] }
 0x1cc   : > { %1229 = vrot.lane.b32.xlu1 %v4692_v19, %s2446_s29  ;;  %1199 = vrot.lane.b32.xlu0 %v4693_v62, %s2446_s29  ;;  %v1473_v50 = vsel %vm1468_vm7, %v1440_v8, %v3674_v29  ;;  %v4702_v29 = vld [vmem:[#allocation87_spill] sm:$0xff]  ;;  %v4704_v28 = vld [vmem:[#allocation26_spill] sm:$0xff] }
 0x1cd   : > { %2250 = vmatmul.mubr.msk.f32.gmra.mxu0 %vm1645_vm12, %v1604_v36  ;;  %v1506_v47 = vsel %vm1501_vm8, %v1473_v50, %v994_v6  ;;  %v4710_v8 = vld [vmem:[#allocation62_spill] sm:$0xff] }
 0x1ce   : > { %v1312_v0 = vpop.permute.xlu1 %1311  ;;  %v996_v35 = vpop.permute.xlu0 %995 }
 0x1cf   : > { %v1620_v21 = vsel %vm1600_vm11, %v1587_v45, %v1312_v0  ;;  %v1507_v62 = vsel %vm1501_vm8, %v3682_v30, %v996_v35  ;;  %v4705_v30 = vld [vmem:[#allocation34_spill] sm:$0xff]  ;;  %v4706_v35 = vld [vmem:[#allocation27_spill] sm:$0xff] }
 0x1d0   : > { %1231 = vrot.lane.b32.xlu1 %v4694_v12, %s2446_s29  ;;  %1293 = vrot.lane.b32.xlu0 %v4695_v54, %s2447_s6 }
 0x1d1   : > { %2274 = vmatmul.mubr.msk.f32.gmra.mxu1 %vm1645_vm12, %v1620_v21 }
 0x1d2   : > { %v1028_v44 = vpop.permute.xlu1 %1027  ;;  %v1090_v24 = vpop.permute.xlu0 %1089 }
 0x1d3   : > { %v1539_v5 = vsel %vm1534_vm9, %v1506_v47, %v1090_v24  ;;  %v1523_v12 = vsel %vm1501_vm8, %v3770_v23, %v1028_v44  ;;  %v597_v24 = vrot.slane %v4703_v57, 2  ;;  %v4707_v44 = vld [vmem:[#allocation36_spill] sm:$0xff] }
 0x1d4   : > { %1325 = vrot.lane.b32.xlu1 %v4696_v53, %s2447_s6  ;;  %1009 = vrot.lane.b32.xlu0 %v4695_v54, %s2444_s10  ;;  %v596_v54 = vrot.slane %v4702_v29, 2 }
 0x1d6   : > { %v1122_v41 = vpop.permute.xlu1 %1121  ;;  %v1092_v63 = vpop.permute.xlu0 %1091  ;;  %v598_v59 = vsel %vm508_vm2, %v596_v54, %v597_v24 }
 0x1d7   : > { %v1555_v6 = vsel %vm1534_vm9, %v1522_v39, %v1122_v41 }
 0x1d8   : > { %1041 = vrot.lane.b32.xlu1 %v4696_v53, %s2444_s10  ;;  %1295 = vrot.lane.b32.xlu0 %v4697_v51, %s2447_s6 }
 0x1da   : > { %v1124_v26 = vpop.permute.xlu1 %1123  ;;  %v1186_v43 = vpop.permute.xlu0 %1185 }
 0x1db   : > { %v1572_v38 = vsel %vm1567_vm10, %v1539_v5, %v1186_v43  ;;  %v1556_v53 = vsel %vm1534_vm9, %v1523_v12, %v1124_v26  ;;  %v4708_v43 = vld [vmem:[#allocation61_spill] sm:$0xff] }
 0x1dc   : > { %1327 = vrot.lane.b32.xlu1 %v4699_v7, %s2447_s6  ;;  %1011 = vrot.lane.b32.xlu0 %v4697_v51, %s2444_s10 }
 0x1de   : > { %v1218_v48 = vpop.permute.xlu1 %1217  ;;  %v1188_v9 = vpop.permute.xlu0 %1187 }
 0x1e0   : > { %1043 = vrot.lane.b32.xlu1 %v4699_v7, %s2444_s10  ;;  %1105 = vrot.lane.b32.xlu0 %v4657_v42, %s2445_s11  ;;  %v1588_v42 = vsel %vm1567_vm10, %v1555_v6, %v1218_v48  ;;  %v4709_v7 = vld [vmem:[#allocation33_spill] sm:$0xff] }
 0x1e1   : > { %v599_v49 = vrot.slane %v4709_v7, 2 }
 0x1e2   : > { %v1220_v1 = vpop.permute.xlu1 %1219  ;;  %v1282_v11 = vpop.permute.xlu0 %1281 }
 0x1e3   : > { %v1605_v10 = vsel %vm1600_vm11, %v1572_v38, %v1282_v11  ;;  %v1589_v41 = vsel %vm1567_vm10, %v1556_v53, %v1220_v1  ;;  %v600_v48 = vsel %vm508_vm2, %v597_v24, %v599_v49  ;;  %v2362_v1 = vpack.i.bf16 %v4663_v46, %v4654_v25 }
 0x1e4   : > { %1137 = vrot.lane.b32.xlu1 %v4702_v29, %s2445_s11  ;;  %1107 = vrot.lane.b32.xlu0 %v4662_v33, %s2445_s11  ;;  %v1540_v33 = vsel %vm1534_vm9, %v1507_v62, %v1092_v63 }
 0x1e5   : > { %2252 = vmatprep.mubr.msk.f32.mxu0 %vm1645_vm12, %v1605_v10  ;;  %v1573_v15 = vsel %vm1567_vm10, %v1540_v33, %v1188_v9 }
 0x1e6   : > { %v1314_v36 = vpop.permute.xlu1 %1313  ;;  %v998_v22 = vpop.permute.xlu0 %997 }
 0x1e7   : > { %v1621_v19 = vsel %vm1600_vm11, %v1588_v42, %v1314_v36  ;;  %v1508_v38 = vsel %vm1501_vm8, %v3686_v34, %v998_v22 }
 0x1e8   : > { %1139 = vrot.lane.b32.xlu1 %v4703_v57, %s2445_s11  ;;  %1201 = vrot.lane.b32.xlu0 %v4704_v28, %s2446_s29 }
 0x1e9   : > { %2276 = vmatprep.mubr.msk.f32.mxu1 %vm1645_vm12, %v1621_v19  ;;  %v4712_v19 = vld [vmem:[#allocation7_spill] sm:$0xff] }
 0x1ea   : > { %v1030_v45 = vpop.permute.xlu1 %1029  ;;  %v1284_v0 = vpop.permute.xlu0 %1283 }
 0x1eb   : > { %v1606_v21 = vsel %vm1600_vm11, %v1573_v15, %v1284_v0  ;;  %v1524_v42 = vsel %vm1501_vm8, %v3774_v27, %v1030_v45  ;;  %v4711_v27 = vld [vmem:[#allocation28_spill] sm:$0xff] }
 0x1ec   : > { %1233 = vrot.lane.b32.xlu1 %v4705_v30, %s2446_s29  ;;  %1203 = vrot.lane.b32.xlu0 %v4706_v35, %s2446_s29  ;;  %v4714_v35 = vld [vmem:[#allocation30_spill] sm:$0xff] }
 0x1ed   : > { %2253 = vmatmul.mubr.msk.f32.gmra.mxu0 %vm1645_vm12, %v1606_v21 }
 0x1ee   : > { %v1316_v63 = vpop.permute.xlu1 %1315  ;;  %v1000_v51 = vpop.permute.xlu0 %999 }
 0x1ef   : > { %v1622_v23 = vsel %vm1600_vm11, %v1589_v41, %v1316_v63  ;;  %v1509_v22 = vsel %vm1501_vm8, %v3694_v55, %v1000_v51  ;;  %v4713_v55 = vld [vmem:[#allocation29_spill] sm:$0xff] }
 0x1f0   : > { %1235 = vrot.lane.b32.xlu1 %v4707_v44, %s2446_s29  ;;  %1297 = vrot.lane.b32.xlu0 %v4708_v43, %s2447_s6 }
 0x1f1   : > { %2277 = vmatmul.mubr.msk.f32.gmra.mxu1 %vm1645_vm12, %v1622_v23 }
 0x1f2   : > { %v1032_v20 = vpop.permute.xlu1 %1031  ;;  %v1094_v26 = vpop.permute.xlu0 %1093 }
 0x1f3   : > { %v1541_v11 = vsel %vm1534_vm9, %v1508_v38, %v1094_v26  ;;  %v1525_v15 = vsel %vm1501_vm8, %v3782_v32, %v1032_v20  ;;  %v4715_v32 = vld [vmem:[#allocation64_spill] sm:$0xff] }
 0x1f4   : > { %1329 = vrot.lane.b32.xlu1 %v598_v59, %s2447_s6  ;;  %1013 = vrot.lane.b32.xlu0 %v4708_v43, %s2444_s10 }
 0x1f6   : > { %v1126_v61 = vpop.permute.xlu1 %1125  ;;  %v1096_v14 = vpop.permute.xlu0 %1095 }
 0x1f7   : > { %v1557_v34 = vsel %vm1534_vm9, %v1524_v42, %v1126_v61 }
 0x1f8   : > { %1045 = vrot.lane.b32.xlu1 %v598_v59, %s2444_s10  ;;  %1299 = vrot.lane.b32.xlu0 %v4710_v8, %s2447_s6 }
 0x1fa   : > { %v1128_v9 = vpop.permute.xlu1 %1127  ;;  %v1190_v50 = vpop.permute.xlu0 %1189 }
 0x1fb   : > { %v1574_v10 = vsel %vm1567_vm10, %v1541_v11, %v1190_v50  ;;  %v1558_v45 = vsel %vm1534_vm9, %v1525_v15, %v1128_v9 }
 0x1fc   : > { %1331 = vrot.lane.b32.xlu1 %v600_v48, %s2447_s6  ;;  %1015 = vrot.lane.b32.xlu0 %v4710_v8, %s2444_s10 }
 0x1fe   : > { %v1222_v47 = vpop.permute.xlu1 %1221  ;;  %v1192_v5 = vpop.permute.xlu0 %1191 }
 0x1ff   : > { %v1590_v25 = vsel %vm1567_vm10, %v1557_v34, %v1222_v47 }
 0x200   : > { %1047 = vrot.lane.b32.xlu1 %v600_v48, %s2444_s10  ;;  %1109 = vrot.lane.b32.xlu0 %v4679_v4, %s2445_s11 }
 0x202   : > { %v1224_v39 = vpop.permute.xlu1 %1223  ;;  %v1286_v29 = vpop.permute.xlu0 %1285 }
 0x203   : > { %v1607_v6 = vsel %vm1600_vm11, %v1574_v10, %v1286_v29  ;;  %v1591_v0 = vsel %vm1567_vm10, %v1558_v45, %v1224_v39 }
 0x204   : > { %2363 = vrot.lane.b32.xlu1 %v2362_v1, %s2445_s11  ;;  %1111 = vrot.lane.b32.xlu0 %v4688_v37, %s2445_s11  ;;  %v1542_v37 = vsel %vm1534_vm9, %v1509_v22, %v1096_v14  ;;  %s188_s11 = sand.u32 1, %s2429_s16  }
 0x205   : > { %2255 = vmatprep.mubr.msk.f32.mxu0 %vm1645_vm12, %v1607_v6  ;;  %v1575_v62 = vsel %vm1567_vm10, %v1542_v37, %v1192_v5  ;;  %s2154_s12 = sshll.u32 %s188_s11, 4  ;;  %s2077_s28 = scalar_lea.sflag [#allocation3], %s188_s11 }
 0x206   : > { %v1318_v46 = vpop.permute.xlu1 %1317  ;;  %v1002_v4 = vpop.permute.xlu0 %1001  ;;  %s190_s13 = scalar_lea.vmem [#allocation2], %s2154_s12 }
 0x207   : > { %v1623_v36 = vsel %vm1600_vm11, %v1590_v25, %v1318_v46  ;;  %v1510_v44 = vsel %vm1501_vm8, %v3698_v17, %v1002_v4  ;;  %s2091_s14 = sshll.u32 %s190_s13, 4  ;;  %s4319_s14 = int_to_ptr.vmem [resolvable:$true] %s2091_s14 }
 0x208   : > { %1205 = vrot.lane.b32.xlu1 %v4711_v27, %s2446_s29  ;;  %2279 = vmatprep.mubr.msk.f32.mxu1 %vm1645_vm12, %v1623_v36  ;;  %p2384_p0 = scmp.lt.s32.totalorder %s4319_s14, %s2382_s30 }
 0x209   : > { %2368 = vrot.lane.b32.xlu0 %v4712_v19, %s2446_s29 }
 0x20a   : > { %v1034_v57 = vpop.permute.xlu1 %1033  ;;  %v1288_v28 = vpop.permute.xlu0 %1287 }
 0x20b   : > { %v1608_v33 = vsel %vm1600_vm11, %v1575_v62, %v1288_v28  ;;  %v1526_v49 = vsel %vm1501_vm8, %v3786_v58, %v1034_v57 }
 0x20c   : > { %1207 = vrot.lane.b32.xlu1 %v4713_v55, %s2446_s29  ;;  %2256 = vmatmul.mubr.msk.f32.gmra.mxu0 %vm1645_vm12, %v1608_v33  ;;  %s2377_s29 = scalar_lea.vmem %s4319_s14, 256 }
 0x20d   : > { %1301 = vrot.lane.b32.xlu0 %v4627_v13, %s2447_s6  ;;  %p2378_p11 = scmp.ne.s32.totalorder %s4319_s14, %s2377_s29  ;;  %p2385_p1 = scmp.lt.s32.totalorder %s2383_s5, %s2377_s29 }
 0x20e   : > { %v1320_v21 = vpop.permute.xlu1 %1319  ;;  %v1004_v12 = vpop.permute.xlu0 %1003 }
 0x20f   : > { %v1624_v30 = vsel %vm1600_vm11, %v1591_v0, %v1320_v21  ;;  %v1511_v9 = vsel %vm1501_vm8, %v3706_v18, %v1004_v12  ;;  %p2379_p12 = pnand %p2378_p11, %p2512_p5  ;;  %p2386_p2 = por %p2385_p1, %p2384_p0 }
 0x210   : > { %2373 = vrot.lane.b32.xlu1 %v4714_v35, %s2447_s6  ;;  %2280 = vmatmul.mubr.msk.f32.gmra.mxu1 %vm1645_vm12, %v1624_v30 }
 0x211   : > { %1303 = vrot.lane.b32.xlu0 %v4715_v32, %s2447_s6  ;;  %p2380_p13 = pneg %p2379_p12 }
 0x212   : > { %v1036_v54 = vpop.permute.xlu1 %1035  ;;  %v1098_v24 = vpop.permute.xlu0 %1097 }
 0x213   : > { %v1543_v43 = vsel %vm1534_vm9, %v1510_v44, %v1098_v24  ;;  %v1527_v1 = vsel %vm1501_vm8, %v3794_v16, %v1036_v54  ;;  %p2387_p3 = pnand %p2386_p2, %p2380_p13 }
 0x216   : > { %v1130_v53 = vpop.permute.xlu1 %1129  ;;  %v1100_v41 = vpop.permute.xlu0 %1099 }
 0x217   : > { %v1559_v61 = vsel %vm1534_vm9, %v1526_v49, %v1130_v53  ;;  %v1544_v50 = vsel %vm1534_vm9, %v1511_v9, %v1100_v41 }
 0x21a   : > { %v1132_v63 = vpop.permute.xlu1 %1131  ;;  %v1194_v13 = vpop.permute.xlu0 %1193 }
 0x21b   : > { %v1576_v59 = vsel %vm1567_vm10, %v1543_v43, %v1194_v13  ;;  %v1560_v11 = vsel %vm1534_vm9, %v1527_v1, %v1132_v63 }
 0x21e   : > { %v1226_v51 = vpop.permute.xlu1 %1225  ;;  %v1196_v23 = vpop.permute.xlu0 %1195 }
 0x21f   : > { %v1592_v14 = vsel %vm1567_vm10, %v1559_v61, %v1226_v51  ;;  %v1577_v47 = vsel %vm1567_vm10, %v1544_v50, %v1196_v23 }
 0x222   : > { %v1228_v20 = vpop.permute.xlu1 %1227  ;;  %v1290_v26 = vpop.permute.xlu0 %1289 }
 0x223   : > { %v1609_v7 = vsel %vm1600_vm11, %v1576_v59, %v1290_v26  ;;  %v1593_v10 = vsel %vm1567_vm10, %v1560_v11, %v1228_v20  ;;  %v4716_v11 = vld [vmem:[#allocation47_spill] sm:$0xff] }
 0x224   : > { %2258 = vmatprep.mubr.msk.f32.mxu0 %vm1645_vm12, %v1609_v7 }
 0x226   : > { %v1322_v8 = vpop.permute.xlu1 %1321  ;;  %v1006_v48 = vpop.permute.xlu0 %1005 }
 0x227   : > { %v1625_v17 = vsel %vm1600_vm11, %v1592_v14, %v1322_v8  ;;  %v1512_v22 = vsel %vm1501_vm8, %v3710_v40, %v1006_v48 }
 0x228   : > { %2282 = vmatprep.mubr.msk.f32.mxu1 %vm1645_vm12, %v1625_v17 }
 0x22a   : > { %v1038_v58 = vpop.permute.xlu1 %1037  ;;  %v1292_v5 = vpop.permute.xlu0 %1291 }
 0x22b   : > { %v1610_v38 = vsel %vm1600_vm11, %v1577_v47, %v1292_v5  ;;  %v1528_v28 = vsel %vm1501_vm8, %v3798_v2, %v1038_v58 }
 0x22c   : > { %2259 = vmatmul.mubr.msk.f32.gmra.mxu0 %vm1645_vm12, %v1610_v38 }
 0x22e   : > { %v1324_v18 = vpop.permute.xlu1 %1323  ;;  %v1008_v39 = vpop.permute.xlu0 %1007 }
 0x22f   : > { %v1626_v29 = vsel %vm1600_vm11, %v1593_v10, %v1324_v18  ;;  %v1513_v0 = vsel %vm1501_vm8, %v3718_v56, %v1008_v39 }
 0x230   : > { %2283 = vmatmul.mubr.msk.f32.gmra.mxu1 %vm1645_vm12, %v1626_v29 }
 0x232   : > { %v1040_v6 = vpop.permute.xlu1 %1039  ;;  %v1102_v42 = vpop.permute.xlu0 %1101 }
 0x233   : > { %v1545_v27 = vsel %vm1534_vm9, %v1512_v22, %v1102_v42  ;;  %v1529_v32 = vsel %vm1501_vm8, %v3806_v3, %v1040_v6 }
 0x236   : > { %v1134_v34 = vpop.permute.xlu1 %1133  ;;  %v1104_v25 = vpop.permute.xlu0 %1103 }
 0x237   : > { %v1561_v33 = vsel %vm1534_vm9, %v1528_v28, %v1134_v34  ;;  %v1546_v21 = vsel %vm1534_vm9, %v1513_v0, %v1104_v25 }
 0x23a   : > { %v1136_v46 = vpop.permute.xlu1 %1135  ;;  %v1198_v4 = vpop.permute.xlu0 %1197 }
 0x23b   : > { %v1578_v37 = vsel %vm1567_vm10, %v1545_v27, %v1198_v4  ;;  %v1562_v54 = vsel %vm1534_vm9, %v1529_v32, %v1136_v46  ;;  %v4222_v4 = vld [vmem:[%s4359_s2] ss:$0 sm:$0xff] }
 0x23e   : > { %v1230_v36 = vpop.permute.xlu1 %1229  ;;  %v1200_v16 = vpop.permute.xlu0 %1199 }
 0x23f   : > { %v1594_v15 = vsel %vm1567_vm10, %v1561_v33, %v1230_v36  ;;  %v1579_v12 = vsel %vm1567_vm10, %v1546_v21, %v1200_v16  ;;  %v4717_v21 = vld [vmem:[#allocation40_spill] sm:$0xff] }
 0x242   : > { %v1232_v19 = vpop.permute.xlu1 %1231  ;;  %v1294_v62 = vpop.permute.xlu0 %1293 }
 0x243   : > { %v1611_v57 = vsel %vm1600_vm11, %v1578_v37, %v1294_v62  ;;  %v1595_v24 = vsel %vm1567_vm10, %v1562_v54, %v1232_v19  ;;  %v4229_v37 = vld [vmem:[%s4360_s3] ss:$0 sm:$0xff] }
 0x244   : > { %2261 = vmatprep.mubr.msk.f32.mxu0 %vm1645_vm12, %v1611_v57 }
 0x246   : > { %v1326_v55 = vpop.permute.xlu1 %1325  ;;  %v1010_v45 = vpop.permute.xlu0 %1009 }
 0x247   : > { %v1627_v40 = vsel %vm1600_vm11, %v1594_v15, %v1326_v55  ;;  %v1514_v20 = vsel %vm1501_vm8, %v3722_v60, %v1010_v45 }
 0x248   : > { %2285 = vmatprep.mubr.msk.f32.mxu1 %vm1645_vm12, %v1627_v40 }
 0x24a   : > { %v1042_v2 = vpop.permute.xlu1 %1041  ;;  %v1296_v30 = vpop.permute.xlu0 %1295 }
 0x24b   : > { %v1612_v35 = vsel %vm1600_vm11, %v1579_v12, %v1296_v30  ;;  %v1530_v8 = vsel %vm1501_vm8, %v3810_v31, %v1042_v2 }
 0x24c   : > { %2262 = vmatmul.mubr.msk.f32.gmra.mxu0 %vm1645_vm12, %v1612_v35 }
 0x24e   : > { %v1328_v56 = vpop.permute.xlu1 %1327  ;;  %v1012_v53 = vpop.permute.xlu0 %1011 }
 0x24f   : > { %v1628_v41 = vsel %vm1600_vm11, %v1595_v24, %v1328_v56  ;;  %v1515_v47 = vsel %vm1501_vm8, %v3730_v52, %v1012_v53 }
 0x250   : > { %2286 = vmatmul.mubr.msk.f32.gmra.mxu1 %vm1645_vm12, %v1628_v41 }
 0x252   : > { %v1044_v63 = vpop.permute.xlu1 %1043  ;;  %v1106_v13 = vpop.permute.xlu0 %1105 }
 0x253   : > { %v1547_v26 = vsel %vm1534_vm9, %v1514_v20, %v1106_v13  ;;  %v1531_v10 = vsel %vm1501_vm8, %v4716_v11, %v1044_v63  ;;  %v4718_v63 = vld [vmem:[#allocation48_spill] sm:$0xff] }
 0x256   : > { %v1138_v51 = vpop.permute.xlu1 %1137  ;;  %v1108_v23 = vpop.permute.xlu0 %1107 }
 0x257   : > { %v1563_v48 = vsel %vm1534_vm9, %v1530_v8, %v1138_v51  ;;  %v1548_v58 = vsel %vm1534_vm9, %v1515_v47, %v1108_v23  ;;  %v4719_v51 = vld [vmem:[#allocation44_spill] sm:$0xff] }
 0x25a   : > { %v1140_v44 = vpop.permute.xlu1 %1139  ;;  %v1202_v43 = vpop.permute.xlu0 %1201 }
 0x25b   : > { %v1580_v7 = vsel %vm1567_vm10, %v1547_v26, %v1202_v43  ;;  %v1564_v18 = vsel %vm1534_vm9, %v1531_v10, %v1140_v44  ;;  %v4720_v44 = vld [vmem:[#allocation49_spill] sm:$0xff] }
 0x25e   : > { %v1234_v59 = vpop.permute.xlu1 %1233  ;;  %v1204_v3 = vpop.permute.xlu0 %1203 }
 0x25f   : > { %v1596_v17 = vsel %vm1567_vm10, %v1563_v48, %v1234_v59  ;;  %v1581_v5 = vsel %vm1567_vm10, %v1548_v58, %v1204_v3 }
 0x262   : > { %v1236_v49 = vpop.permute.xlu1 %1235  ;;  %v1298_v61 = vpop.permute.xlu0 %1297 }
 0x263   : > { %v1613_v14 = vsel %vm1600_vm11, %v1580_v7, %v1298_v61  ;;  %v1597_v39 = vsel %vm1567_vm10, %v1564_v18, %v1236_v49 }
 0x264   : > { %2264 = vmatprep.mubr.msk.f32.mxu0 %vm1645_vm12, %v1613_v14 }
 0x266   : > { %v1330_v9 = vpop.permute.xlu1 %1329  ;;  %v1014_v50 = vpop.permute.xlu0 %1013 }
 0x267   : > { %v1629_v60 = vsel %vm1600_vm11, %v1596_v17, %v1330_v9  ;;  %v1516_v12 = vsel %vm1501_vm8, %v4717_v21, %v1014_v50 }
 0x268   : > { %2288 = vmatprep.mubr.msk.f32.mxu1 %vm1645_vm12, %v1629_v60 }
 0x26a   : > { %v1046_v31 = vpop.permute.xlu1 %1045  ;;  %v1300_v38 = vpop.permute.xlu0 %1299 }
 0x26b   : > { %v1614_v1 = vsel %vm1600_vm11, %v1581_v5, %v1300_v38  ;;  %v1532_v13 = vsel %vm1501_vm8, %v4718_v63, %v1046_v31 }
 0x26c   : > { %2265 = vmatmul.mubr.msk.f32.gmra.mxu0 %vm1645_vm12, %v1614_v1 }
 0x26e   : > { %v1332_v52 = vpop.permute.xlu1 %1331  ;;  %v1016_v29 = vpop.permute.xlu0 %1015 }
 0x26f   : > { %v1630_v6 = vsel %vm1600_vm11, %v1597_v39, %v1332_v52  ;;  %v1517_v23 = vsel %vm1501_vm8, %v4719_v51, %v1016_v29 }
 0x270   : > { %2289 = vmatmul.mubr.msk.f32.gmra.mxu1 %vm1645_vm12, %v1630_v6 }
 0x271   : > { %v2248_v42 = vpop.f32.mrf.mxu0  ;;  %v2272_v34 = vpop.f32.mrf.mxu1 }
 0x272   : > { %v1048_v25 = vpop.permute.xlu1 %1047  ;;  %v1110_v46 = vpop.permute.xlu0 %1109  ;;  %v1818_v19 = vadd.f32 %v2248_v42, %v4222_v4  ;;  %v1898_v62 = vadd.f32 %v2272_v34, %v4222_v4 }
 0x273   : > { %v1812_v36 = vpop.f32.mrf.mxu0  ;;  %v1892_v16 = vpop.f32.mrf.mxu1  ;;  %v1549_v2 = vsel %vm1534_vm9, %v1516_v12, %v1110_v46  ;;  %v1533_v43 = vsel %vm1501_vm8, %v4720_v44, %v1048_v25 }
 0x274   : > { %v1813_v22 = vadd.f32 %v4222_v4, %v1812_v36  ;;  %v1893_v27 = vadd.f32 %v4222_v4, %v1892_v16  ;;  %v1979_v55 = vmul.f32 %v4229_v37, %v1818_v19  ;;  %v1995_v45 = vmul.f32 %v4229_v37, %v1898_v62 }
 0x276   : > { %v1978_v57 = vmul.f32 %v4229_v37, %v1813_v22  ;;  %v1994_v28 = vmul.f32 %v4229_v37, %v1893_v27  ;;  %v2364_v33 = vpop.permute.xlu1 %2363  ;;  %v1112_v15 = vpop.permute.xlu0 %1111 }
 0x277   : > { %v2365_v30 = vunpack.i.l.bf16 %v2364_v33  ;;  %v2366_v32 = vunpack.i.h.bf16 %v2364_v33  ;;  %v1550_v3 = vsel %vm1534_vm9, %v1517_v23, %v1112_v15 }
 0x278   : > { %2010 = vxpose.xlu1.b32.start [1/16] (narrow) %v1978_v57, 8  ;;  %2042 = vxpose.xlu0.b32.start [1/16] (narrow) %v1994_v28, 8 }
 0x279   : > { %v1565_v59 = vsel %vm1534_vm9, %v1532_v13, %v2365_v30  ;;  %v1566_v26 = vsel %vm1534_vm9, %v1533_v43, %v2366_v32 }
 0x27a   : > { %v1206_v40 = vpop.permute.xlu1 %1205 }
 0x27b   : > { %v2369_v0 = vpop.permute.xlu0 %2368  ;;  %v1582_v54 = vsel %vm1567_vm10, %v1549_v2, %v1206_v40 }
 0x27c   : > { %2011 = vxpose.xlu1.b32.cont [2/16] (narrow) %v1979_v55, 8  ;;  %2043 = vxpose.xlu0.b32.cont [2/16] (narrow) %v1995_v45, 8  ;;  %v2371_v56 = vunpack.i.h.bf16 %v2369_v0  ;;  %v2370_v53 = vunpack.i.l.bf16 %v2369_v0 }
 0x27e   : > { %v1208_v35 = vpop.permute.xlu1 %1207  ;;  %v1598_v48 = vsel %vm1567_vm10, %v1565_v59, %v2370_v53  ;;  %v1599_v17 = vsel %vm1567_vm10, %v1566_v26, %v2371_v56 }
 0x27f   : > { %v1302_v24 = vpop.permute.xlu0 %1301  ;;  %v1583_v7 = vsel %vm1567_vm10, %v1550_v3, %v1208_v35 }
 0x280   : > { %v1615_v41 = vsel %vm1600_vm11, %v1582_v54, %v1302_v24 }
 0x281   : > { %2267 = vmatprep.mubr.msk.f32.mxu0 %vm1645_vm12, %v1615_v41 }
 0x282   : > { %v2374_v20 = vpop.permute.xlu1 %2373 }
 0x283   : > { %v2376_v49 = vunpack.i.h.bf16 %v2374_v20  ;;  %v2375_v61 = vunpack.i.l.bf16 %v2374_v20  ;;  %v1304_v14 = vpop.permute.xlu0 %1303 }
 0x284   : > { %v1616_v8 = vsel %vm1600_vm11, %v1583_v7, %v1304_v14 }
 0x285   : > { %2268 = vmatmul.mubr.msk.f32.gmra.mxu0 %vm1645_vm12, %v1616_v8  ;;  %v1631_v9 = vsel %vm1600_vm11, %v1598_v48, %v2375_v61  ;;  %v1632_v50 = vsel %vm1600_vm11, %v1599_v17, %v2376_v49 }
 0x286   : > { %2291 = vmatprep.mubr.msk.f32.mxu1 %vm1645_vm12, %v1631_v9 }
 0x287   : > { %2292 = vmatmul.mubr.msk.f32.gmra.mxu1 %vm1645_vm12, %v1632_v50 }
 0x28d   : > { %v2251_v60 = vpop.f32.mrf.mxu0 }
 0x28e   : > { %v1828_v31 = vadd.f32 %v2251_v60, %v4222_v4 }
 0x28f   : > { %v1822_v47 = vpop.f32.mrf.mxu0 }
 0x290   : > { %v1823_v58 = vadd.f32 %v4222_v4, %v1822_v47  ;;  %v1981_v10 = vmul.f32 %v4229_v37, %v1828_v31 }
 0x291   : > { %v2275_v5 = vpop.f32.mrf.mxu1 }
 0x292   : > { %v1980_v38 = vmul.f32 %v4229_v37, %v1823_v58  ;;  %v1908_v18 = vadd.f32 %v2275_v5, %v4222_v4 }
 0x293   : > { %v1902_v1 = vpop.f32.mrf.mxu1 }
 0x294   : > { %v1903_v11 = vadd.f32 %v4222_v4, %v1902_v1  ;;  %2012 = vxpose.xlu1.b32.cont [3/16] (narrow) %v1980_v38, 8  ;;  %v1997_v52 = vmul.f32 %v4229_v37, %v1908_v18 }
 0x296   : > { %v1996_v39 = vmul.f32 %v4229_v37, %v1903_v11 }
 0x298   : > { %2044 = vxpose.xlu0.b32.cont [3/16] (narrow) %v1996_v39, 8  ;;  %2013 = vxpose.xlu1.b32.cont [4/16] (narrow) %v1981_v10, 8 }
 0x29c   : > { %2045 = vxpose.xlu0.b32.cont [4/16] (narrow) %v1997_v52, 8 }
 0x2ad   : > { %v2254_v29 = vpop.f32.mrf.mxu0 }
 0x2ae   : > { %v1838_v25 = vadd.f32 %v2254_v29, %v4222_v4 }
 0x2af   : > { %v1832_v6 = vpop.f32.mrf.mxu0 }
 0x2b0   : > { %v1833_v42 = vadd.f32 %v4222_v4, %v1832_v6  ;;  %v1983_v22 = vmul.f32 %v4229_v37, %v1838_v25 }
 0x2b1   : > { %v2278_v34 = vpop.f32.mrf.mxu1 }
 0x2b2   : > { %v1982_v46 = vmul.f32 %v4229_v37, %v1833_v42  ;;  %v1918_v27 = vadd.f32 %v2278_v34, %v4222_v4 }
 0x2b3   : > { %v1912_v36 = vpop.f32.mrf.mxu1 }
 0x2b4   : > { %v1913_v16 = vadd.f32 %v4222_v4, %v1912_v36  ;;  %2014 = vxpose.xlu1.b32.cont [5/16] (narrow) %v1982_v46, 8  ;;  %v1999_v62 = vmul.f32 %v4229_v37, %v1918_v27 }
 0x2b6   : > { %v1998_v19 = vmul.f32 %v4229_v37, %v1913_v16 }
 0x2b8   : > { %2046 = vxpose.xlu0.b32.cont [5/16] (narrow) %v1998_v19, 8  ;;  %2015 = vxpose.xlu1.b32.cont [6/16] (narrow) %v1983_v22, 8 }
 0x2bc   : > { %2047 = vxpose.xlu0.b32.cont [6/16] (narrow) %v1999_v62, 8 }
 0x2cc   : > { %v2257_v57 = vpop.f32.mrf.mxu0 }
 0x2cd   : > { %v1848_v55 = vadd.f32 %v2257_v57, %v4222_v4 }
 0x2ce   : > { %v1842_v28 = vpop.f32.mrf.mxu0 }
 0x2cf   : > { %v1843_v33 = vadd.f32 %v4222_v4, %v1842_v28  ;;  %v1985_v21 = vmul.f32 %v4229_v37, %v1848_v55 }
 0x2d0   : > { %v2281_v15 = vpop.f32.mrf.mxu1 }
 0x2d1   : > { %v1984_v45 = vmul.f32 %v4229_v37, %v1843_v33  ;;  %v1928_v12 = vadd.f32 %v2281_v15, %v4222_v4 }
 0x2d2   : > { %v1922_v40 = vpop.f32.mrf.mxu1 }
 0x2d3   : > { %v1923_v0 = vadd.f32 %v4222_v4, %v1922_v40  ;;  %2016 = vxpose.xlu1.b32.cont [7/16] (narrow) %v1984_v45, 8  ;;  %v2001_v30 = vmul.f32 %v4229_v37, %v1928_v12 }
 0x2d5   : > { %v2000_v2 = vmul.f32 %v4229_v37, %v1923_v0 }
 0x2d7   : > { %2048 = vxpose.xlu0.b32.cont [7/16] (narrow) %v2000_v2, 8  ;;  %2017 = vxpose.xlu1.b32.cont [8/16] (narrow) %v1985_v21, 8 }
 0x2db   : > { %2049 = vxpose.xlu0.b32.cont [8/16] (narrow) %v2001_v30, 8 }
 0x2ec   : > { %v2260_v35 = vpop.f32.mrf.mxu0 }
 0x2ed   : > { %v1858_v56 = vadd.f32 %v2260_v35, %v4222_v4 }
 0x2ee   : > { %v1852_v32 = vpop.f32.mrf.mxu0 }
 0x2ef   : > { %v1853_v54 = vadd.f32 %v4222_v4, %v1852_v32  ;;  %v1987_v13 = vmul.f32 %v4229_v37, %v1858_v56 }
 0x2f0   : > { %v2284_v24 = vpop.f32.mrf.mxu1 }
 0x2f1   : > { %v1986_v53 = vmul.f32 %v4229_v37, %v1853_v54  ;;  %v1938_v51 = vadd.f32 %v2284_v24, %v4222_v4 }
 0x2f2   : > { %v1932_v41 = vpop.f32.mrf.mxu1 }
 0x2f3   : > { %v1933_v63 = vadd.f32 %v4222_v4, %v1932_v41  ;;  %2018 = vxpose.xlu1.b32.cont [9/16] (narrow) %v1986_v53, 8  ;;  %v2003_v44 = vmul.f32 %v4229_v37, %v1938_v51 }
 0x2f5   : > { %v2002_v23 = vmul.f32 %v4229_v37, %v1933_v63 }
 0x2f7   : > { %2050 = vxpose.xlu0.b32.cont [9/16] (narrow) %v2002_v23, 8  ;;  %2019 = vxpose.xlu1.b32.cont [10/16] (narrow) %v1987_v13, 8 }
 0x2fb   : > { %2051 = vxpose.xlu0.b32.cont [10/16] (narrow) %v2003_v44, 8 }
 0x30c   : > { %v2263_v43 = vpop.f32.mrf.mxu0 }
 0x30d   : > { %v1868_v26 = vadd.f32 %v2263_v43, %v4222_v4 }
 0x30e   : > { %v1862_v59 = vpop.f32.mrf.mxu0 }
 0x30f   : > { %v1863_v3 = vadd.f32 %v4222_v4, %v1862_v59  ;;  %v1989_v14 = vmul.f32 %v4229_v37, %v1868_v26 }
 0x310   : > { %v2287_v20 = vpop.f32.mrf.mxu1 }
 0x311   : > { %v1988_v7 = vmul.f32 %v4229_v37, %v1863_v3  ;;  %v1948_v8 = vadd.f32 %v2287_v20, %v4222_v4 }
 0x312   : > { %v1942_v49 = vpop.f32.mrf.mxu1 }
 0x313   : > { %v1943_v61 = vadd.f32 %v4222_v4, %v1942_v49  ;;  %2020 = vxpose.xlu1.b32.cont [11/16] (narrow) %v1988_v7, 8  ;;  %v2005_v17 = vmul.f32 %v4229_v37, %v1948_v8 }
 0x315   : > { %v2004_v48 = vmul.f32 %v4229_v37, %v1943_v61 }
 0x317   : > { %2052 = vxpose.xlu0.b32.cont [11/16] (narrow) %v2004_v48, 8  ;;  %2021 = vxpose.xlu1.b32.cont [12/16] (narrow) %v1989_v14, 8 }
 0x31b   : > { %2053 = vxpose.xlu0.b32.cont [12/16] (narrow) %v2005_v17, 8 }
 0x32c   : > { %v2266_v9 = vpop.f32.mrf.mxu0 }
 0x32d   : > { %v1878_v58 = vadd.f32 %v2266_v9, %v4222_v4 }
 0x32e   : > { %v1872_v50 = vpop.f32.mrf.mxu0 }
 0x32f   : > { %v1873_v60 = vadd.f32 %v4222_v4, %v1872_v50  ;;  %v1991_v1 = vmul.f32 %v4229_v37, %v1878_v58 }
 0x330   : > { %v2290_v47 = vpop.f32.mrf.mxu1 }
 0x331   : > { %v1990_v5 = vmul.f32 %v4229_v37, %v1873_v60  ;;  %v1958_v11 = vadd.f32 %v2290_v47, %v4222_v4 }
 0x332   : > { %v1952_v31 = vpop.f32.mrf.mxu1 }
 0x333   : > { %v1953_v38 = vadd.f32 %v4222_v4, %v1952_v31  ;;  %2022 = vxpose.xlu1.b32.cont [13/16] (narrow) %v1990_v5, 8  ;;  %v2007_v18 = vmul.f32 %v4229_v37, %v1958_v11 }
 0x335   : > { %v2006_v10 = vmul.f32 %v4229_v37, %v1953_v38 }
 0x337   : > { %2054 = vxpose.xlu0.b32.cont [13/16] (narrow) %v2006_v10, 8  ;;  %2023 = vxpose.xlu1.b32.cont [14/16] (narrow) %v1991_v1, 8 }
 0x33b   : > { %2055 = vxpose.xlu0.b32.cont [14/16] (narrow) %v2007_v18, 8 }
 0x345   : > { %v2269_v39 = vpop.f32.mrf.mxu0 }
 0x346   : > { %v1888_v34 = vadd.f32 %v2269_v39, %v4222_v4 }
 0x347   : > { %v1882_v52 = vpop.f32.mrf.mxu0  ;;  %v2293_v29 = vpop.f32.mrf.mxu1 }
 0x348   : > { %v1883_v6 = vadd.f32 %v4222_v4, %v1882_v52  ;;  %v1968_v36 = vadd.f32 %v2293_v29, %v4222_v4  ;;  %v1993_v22 = vmul.f32 %v4229_v37, %v1888_v34 }
 0x349   : > { %v1962_v42 = vpop.f32.mrf.mxu1 }
 0x34a   : > { %v1992_v25 = vmul.f32 %v4229_v37, %v1883_v6  ;;  %v1963_v46 = vadd.f32 %v4222_v4, %v1962_v42  ;;  %v2009_v27 = vmul.f32 %v4229_v37, %v1968_v36 }
 0x34c   : > { %v2008_v16 = vmul.f32 %v4229_v37, %v1963_v46  ;;  %2024 = vxpose.xlu1.b32.cont [15/16] (narrow) %v1992_v25, 8 }
 0x34e   : > { %2056 = vxpose.xlu0.b32.cont [15/16] (narrow) %v2008_v16, 8 }
 0x350   : > { %2025 = vxpose.xlu1.b32.end [16/16] (narrow) %v1993_v22, 8 }
 0x352   : > { %2057 = vxpose.xlu0.b32.end [16/16] (narrow) %v2009_v27, 8 }
 0x390   : > { %v2026_v19 = vpop.trf.xlu1 }
 0x391   : > { %2074 = vst [vmem:[%s190_s13] sm:$0xff] %v2026_v19 }
 0x392   : > { %v2058_v4 = vpop.trf.xlu0 }
 0x393   : > { %2075 = vst [vmem:[%s190_s13 + $0x8] sm:$0xff] %v2058_v4 }
 0x394   : > { %2390 = shalt.err (!%p2387_p3)
}
 0x395   : > { %s2391_s6 = scalar_lea.hbm %s2089_s27, 256  ;;  %s2395_s9 = scalar_lea.hbm %s4361_s4, 512 }
 0x396   : > { %p2392_p4 = scmp.ne.s32.totalorder %s2089_s27, %s2391_s6  ;;  %p2396_p9 = scmp.lt.s32.totalorder %s2089_s27, %s4361_s4 }
 0x397   : > { %p2397_p10 = scmp.lt.s32.totalorder %s2395_s9, %s2391_s6 }
 0x398   : > { %p2393_p7 = pnand %p2392_p4, %p2512_p5 }
 0x399   : > { %p2398_p11 = por %p2397_p10, %p2396_p9 }
 0x39a   : > { %p2394_p8 = pneg %p2393_p7 }
 0x39c   : > { %p2399_p12 = pnand %p2398_p11, %p2394_p8 }
 0x39e   : > { %2402 = shalt.err (!%p2399_p12)
}
 0x39f   : > { %2304 = dma.vmem_to_hbm [thread:$0]  (%p2512_p5), %s4319_s14, 256, %s2089_s27, %s2077_s28  }
 0x3a0 PF: > { %p2310_p13 = scmp.ge.s32.totalorder %s2437_s18, 2  ;;  %s2103_s12 = sand.u32 1, %s2425_s15  }
 0x3a1   : > { %s2104_s13 = scalar_lea.sflag [#allocation3], %s2103_s12 }
 0x3a2   : > { %p2307_p0 = pnand %p2310_p13, %p2516_p6 }
 0x3a4   : > { %p2308_p1 = pneg %p2307_p0 }
 0x3a6   : > { %2420 = dma.done.wait (%p2308_p1), %s2104_s13, 256  }
 0x3a7   : > { %2422 = vsyncadd (%p2308_p1), %s2104_s13, 4294967040  ;;  %p14_p2 = scmp.ge.s32.totalorder %s2499_s21, 4   ;;  %s4721_s15 = smov %s2429_s16 }
 0x3a8   : > { %s4722_s16 = smov %s2433_s17  ;;  %s4723_s17 = smov %s2510_s24 }
 0x3a9   : > { %s4724_s18 = smov %s2499_s21  ;;  %16 = sbr.rel (!%p14_p2) target bundleno = 3 (0x3), region = 71 }
 0x3ae   :  { %2109 = vsyncpa [#allocation3], 1 }
 0x3af   :  { %2111 = vsyncpa [#allocation3 + $0x1], 1 }

</bundles_post_ra>
